<compile_context>
chip_gen: v7x
topology: tpu7x:2x2x1
jax: 0.10.0
libtpu: 0.0.40
codegen_flags: <defaults>
</compile_context>

<pallas_src>
import jax
import jax.numpy as jnp
from jax.experimental import pallas as pl
from jax.experimental.pallas import tpu as pltpu

N_FEATURES = 32


def mlp_kernel(x_ref, w1_ref, b1_ref, w2_ref, b2_ref, o_ref):
    # x_ref/o_ref: (block_rows, lanes) f32 VMEM tiles (batch is lane-dense).
    # w1_ref/b1_ref/w2_ref: (32,) f32 in SMEM; b2_ref: (1,) f32 in SMEM.
    x = x_ref[...]
    acc = jnp.zeros_like(x)
    # Fused two-layer MLP: 32-step unrolled VPU loop over hidden features.
    # Scalar weights come from SMEM and broadcast inside each VPU op.
    for f in range(N_FEATURES):
        h = jnp.maximum(w1_ref[f] * x + b1_ref[f], 0.0)
        acc = acc + w2_ref[f] * h
    o_ref[...] = acc + b2_ref[0]


def network_forward(x, w1, b1, w2, b2, *, lanes=512, max_block_rows=512):
    """x: (N, 1) f32. w1, b1, w2: (32,) f32. b2: (1,) f32. Returns (N, 1) f32.

    w1 == linear1.weight[:, 0], b1 == linear1.bias,
    w2 == linear2.weight[0, :], b2 == linear2.bias.
    """
    n = x.shape[0]
    xf = jnp.reshape(x, (-1,)).astype(jnp.float32)

    # Lane-dense layout: pad N up and fold onto (rows, lanes), lanes % 128 == 0.
    rows = -(-n // lanes)                                       # ceil-div
    block_rows = min(max_block_rows, ((rows + 7) // 8) * 8)     # sublane multiple of 8
    padded_rows = -(-rows // block_rows) * block_rows
    padded_n = padded_rows * lanes
    if padded_n != n:
        xf = jnp.pad(xf, (0, padded_n - n))
    x2d = xf.reshape(padded_rows, lanes)

    grid = (padded_rows // block_rows,)
    tile = pl.BlockSpec((block_rows, lanes), lambda i: (i, 0))
    smem = pl.BlockSpec(memory_space=pltpu.MemorySpace.SMEM)

    out2d = pl.pallas_call(
        mlp_kernel,
        out_shape=jax.ShapeDtypeStruct((padded_rows, lanes), jnp.float32),
        grid_spec=pltpu.PrefetchScalarGridSpec(
            num_scalar_prefetch=0,
            grid=grid,
            in_specs=[tile, smem, smem, smem, smem],
            out_specs=tile,
        ),
        compiler_params=pltpu.CompilerParams(
            dimension_semantics=("parallel",),
        ),
    )(x2d, w1, b1, w2, b2)

    # Strip the padding and restore the (N, 1) PyTorch output shape.
    return out2d.reshape(-1)[:n].reshape(n, 1)


def init_params(key):
    """Deterministic init mimicking nn.Linear defaults (U[-1/sqrt(fan_in), +])."""
    k1, k2, k3, k4 = jax.random.split(key, 4)
    bound1 = 1.0                 # linear1: in_features = 1
    bound2 = 1.0 / (32.0 ** 0.5)  # linear2: in_features = 32
    w1 = jax.random.uniform(k1, (N_FEATURES,), jnp.float32, -bound1, bound1)  # linear1.weight[:, 0]
    b1 = jax.random.uniform(k2, (N_FEATURES,), jnp.float32, -bound1, bound1)  # linear1.bias
    w2 = jax.random.uniform(k3, (N_FEATURES,), jnp.float32, -bound2, bound2)  # linear2.weight[0, :]
    b2 = jax.random.uniform(k4, (1,), jnp.float32, -bound2, bound2)           # linear2.bias
    return w1, b1, w2, b2


if __name__ == "__main__":
    key = jax.random.PRNGKey(0)
    w1, b1, w2, b2 = init_params(key)

    # Matches the spec: x_data = torch.linspace(-5, 5, data_n).reshape(data_n, 1)
    data_n = 500
    x = jnp.linspace(-5.0, 5.0, data_n, dtype=jnp.float32).reshape(data_n, 1)

    y_pred = jax.jit(network_forward)(x, w1, b1, w2, b2)
    jax.block_until_ready(y_pred)

    # Pure-JAX reference of Network.forward
    hidden = jnp.maximum(x * w1[None, :] + b1[None, :], 0.0)   # (N, 32)
    ref = hidden @ w2.reshape(N_FEATURES, 1) + b2[0]           # (N, 1)

    assert y_pred.shape == (data_n, 1)
    assert jnp.allclose(y_pred, ref, atol=1e-4, rtol=1e-5), float(
        jnp.max(jnp.abs(y_pred - ref))
    )

    # TODO(synk): the `learn` training loop (SGD + backward) is host-side and
    # not part of the forward kernel.

    print("KERNEL_OK")
</pallas_src>

<mosaic_0001>
module attributes {stable_mosaic.version = 11 : i64} {
  func.func @mlp_kernel(%arg0: i32, %arg1: memref<8x512xf32, #tpu.memory_space<vmem>>, %arg2: memref<32xf32, #tpu.memory_space<smem>>, %arg3: memref<32xf32, #tpu.memory_space<smem>>, %arg4: memref<32xf32, #tpu.memory_space<smem>>, %arg5: memref<1xf32, #tpu.memory_space<smem>>, %arg6: memref<8x512xf32, #tpu.memory_space<vmem>>) attributes {dimension_semantics = [#tpu.dimension_semantics<parallel>], iteration_bounds = array<i64: 1>, scalar_prefetch = 0 : i64, scratch_operands = 0 : i64, tpu.core_type = #tpu.core_type<tc>, window_params = [{transform_indices = @transform_0, window_bounds = array<i64: 8, 512>}, {transform_indices = @transform_1, window_bounds = array<i64: 32>}, {transform_indices = @transform_2, window_bounds = array<i64: 32>}, {transform_indices = @transform_3, window_bounds = array<i64: 32>}, {transform_indices = @transform_4, window_bounds = array<i64: 1>}, {transform_indices = @transform_5, window_bounds = array<i64: 8, 512>}]} {
    %c0 = arith.constant 0 : index
    %c0_0 = arith.constant 0 : index
    %0 = vector.load %arg1[%c0, %c0_0] : memref<8x512xf32, #tpu.memory_space<vmem>>, vector<8x512xf32>
    %cst = arith.constant 0.000000e+00 : f32
    %1 = vector.broadcast %cst : f32 to vector<8x512xf32>
    %c0_1 = arith.constant 0 : index
    %2 = memref.load %arg2[%c0_1] : memref<32xf32, #tpu.memory_space<smem>>
    %3 = vector.broadcast %2 : f32 to vector<8x512xf32>
    %4 = arith.mulf %3, %0 : vector<8x512xf32>
    %c0_2 = arith.constant 0 : index
    %5 = memref.load %arg3[%c0_2] : memref<32xf32, #tpu.memory_space<smem>>
    %6 = vector.broadcast %5 : f32 to vector<8x512xf32>
    %7 = arith.addf %4, %6 : vector<8x512xf32>
    %cst_3 = arith.constant 0.000000e+00 : f32
    %8 = vector.broadcast %cst_3 : f32 to vector<8x512xf32>
    %9 = arith.maximumf %7, %8 : vector<8x512xf32>
    %c0_4 = arith.constant 0 : index
    %10 = memref.load %arg4[%c0_4] : memref<32xf32, #tpu.memory_space<smem>>
    %11 = vector.broadcast %10 : f32 to vector<8x512xf32>
    %12 = arith.mulf %11, %9 : vector<8x512xf32>
    %13 = arith.addf %1, %12 : vector<8x512xf32>
    %c1 = arith.constant 1 : index
    %14 = memref.load %arg2[%c1] : memref<32xf32, #tpu.memory_space<smem>>
    %15 = vector.broadcast %14 : f32 to vector<8x512xf32>
    %16 = arith.mulf %15, %0 : vector<8x512xf32>
    %c1_5 = arith.constant 1 : index
    %17 = memref.load %arg3[%c1_5] : memref<32xf32, #tpu.memory_space<smem>>
    %18 = vector.broadcast %17 : f32 to vector<8x512xf32>
    %19 = arith.addf %16, %18 : vector<8x512xf32>
    %cst_6 = arith.constant 0.000000e+00 : f32
    %20 = vector.broadcast %cst_6 : f32 to vector<8x512xf32>
    %21 = arith.maximumf %19, %20 : vector<8x512xf32>
    %c1_7 = arith.constant 1 : index
    %22 = memref.load %arg4[%c1_7] : memref<32xf32, #tpu.memory_space<smem>>
    %23 = vector.broadcast %22 : f32 to vector<8x512xf32>
    %24 = arith.mulf %23, %21 : vector<8x512xf32>
    %25 = arith.addf %13, %24 : vector<8x512xf32>
    %c2 = arith.constant 2 : index
    %26 = memref.load %arg2[%c2] : memref<32xf32, #tpu.memory_space<smem>>
    %27 = vector.broadcast %26 : f32 to vector<8x512xf32>
    %28 = arith.mulf %27, %0 : vector<8x512xf32>
    %c2_8 = arith.constant 2 : index
    %29 = memref.load %arg3[%c2_8] : memref<32xf32, #tpu.memory_space<smem>>
    %30 = vector.broadcast %29 : f32 to vector<8x512xf32>
    %31 = arith.addf %28, %30 : vector<8x512xf32>
    %cst_9 = arith.constant 0.000000e+00 : f32
    %32 = vector.broadcast %cst_9 : f32 to vector<8x512xf32>
    %33 = arith.maximumf %31, %32 : vector<8x512xf32>
    %c2_10 = arith.constant 2 : index
    %34 = memref.load %arg4[%c2_10] : memref<32xf32, #tpu.memory_space<smem>>
    %35 = vector.broadcast %34 : f32 to vector<8x512xf32>
    %36 = arith.mulf %35, %33 : vector<8x512xf32>
    %37 = arith.addf %25, %36 : vector<8x512xf32>
    %c3 = arith.constant 3 : index
    %38 = memref.load %arg2[%c3] : memref<32xf32, #tpu.memory_space<smem>>
    %39 = vector.broadcast %38 : f32 to vector<8x512xf32>
    %40 = arith.mulf %39, %0 : vector<8x512xf32>
    %c3_11 = arith.constant 3 : index
    %41 = memref.load %arg3[%c3_11] : memref<32xf32, #tpu.memory_space<smem>>
    %42 = vector.broadcast %41 : f32 to vector<8x512xf32>
    %43 = arith.addf %40, %42 : vector<8x512xf32>
    %cst_12 = arith.constant 0.000000e+00 : f32
    %44 = vector.broadcast %cst_12 : f32 to vector<8x512xf32>
    %45 = arith.maximumf %43, %44 : vector<8x512xf32>
    %c3_13 = arith.constant 3 : index
    %46 = memref.load %arg4[%c3_13] : memref<32xf32, #tpu.memory_space<smem>>
    %47 = vector.broadcast %46 : f32 to vector<8x512xf32>
    %48 = arith.mulf %47, %45 : vector<8x512xf32>
    %49 = arith.addf %37, %48 : vector<8x512xf32>
    %c4 = arith.constant 4 : index
    %50 = memref.load %arg2[%c4] : memref<32xf32, #tpu.memory_space<smem>>
    %51 = vector.broadcast %50 : f32 to vector<8x512xf32>
    %52 = arith.mulf %51, %0 : vector<8x512xf32>
    %c4_14 = arith.constant 4 : index
    %53 = memref.load %arg3[%c4_14] : memref<32xf32, #tpu.memory_space<smem>>
    %54 = vector.broadcast %53 : f32 to vector<8x512xf32>
    %55 = arith.addf %52, %54 : vector<8x512xf32>
    %cst_15 = arith.constant 0.000000e+00 : f32
    %56 = vector.broadcast %cst_15 : f32 to vector<8x512xf32>
    %57 = arith.maximumf %55, %56 : vector<8x512xf32>
    %c4_16 = arith.constant 4 : index
    %58 = memref.load %arg4[%c4_16] : memref<32xf32, #tpu.memory_space<smem>>
    %59 = vector.broadcast %58 : f32 to vector<8x512xf32>
    %60 = arith.mulf %59, %57 : vector<8x512xf32>
    %61 = arith.addf %49, %60 : vector<8x512xf32>
    %c5 = arith.constant 5 : index
    %62 = memref.load %arg2[%c5] : memref<32xf32, #tpu.memory_space<smem>>
    %63 = vector.broadcast %62 : f32 to vector<8x512xf32>
    %64 = arith.mulf %63, %0 : vector<8x512xf32>
    %c5_17 = arith.constant 5 : index
    %65 = memref.load %arg3[%c5_17] : memref<32xf32, #tpu.memory_space<smem>>
    %66 = vector.broadcast %65 : f32 to vector<8x512xf32>
    %67 = arith.addf %64, %66 : vector<8x512xf32>
    %cst_18 = arith.constant 0.000000e+00 : f32
    %68 = vector.broadcast %cst_18 : f32 to vector<8x512xf32>
    %69 = arith.maximumf %67, %68 : vector<8x512xf32>
    %c5_19 = arith.constant 5 : index
    %70 = memref.load %arg4[%c5_19] : memref<32xf32, #tpu.memory_space<smem>>
    %71 = vector.broadcast %70 : f32 to vector<8x512xf32>
    %72 = arith.mulf %71, %69 : vector<8x512xf32>
    %73 = arith.addf %61, %72 : vector<8x512xf32>
    %c6 = arith.constant 6 : index
    %74 = memref.load %arg2[%c6] : memref<32xf32, #tpu.memory_space<smem>>
    %75 = vector.broadcast %74 : f32 to vector<8x512xf32>
    %76 = arith.mulf %75, %0 : vector<8x512xf32>
    %c6_20 = arith.constant 6 : index
    %77 = memref.load %arg3[%c6_20] : memref<32xf32, #tpu.memory_space<smem>>
    %78 = vector.broadcast %77 : f32 to vector<8x512xf32>
    %79 = arith.addf %76, %78 : vector<8x512xf32>
    %cst_21 = arith.constant 0.000000e+00 : f32
    %80 = vector.broadcast %cst_21 : f32 to vector<8x512xf32>
    %81 = arith.maximumf %79, %80 : vector<8x512xf32>
    %c6_22 = arith.constant 6 : index
    %82 = memref.load %arg4[%c6_22] : memref<32xf32, #tpu.memory_space<smem>>
    %83 = vector.broadcast %82 : f32 to vector<8x512xf32>
    %84 = arith.mulf %83, %81 : vector<8x512xf32>
    %85 = arith.addf %73, %84 : vector<8x512xf32>
    %c7 = arith.constant 7 : index
    %86 = memref.load %arg2[%c7] : memref<32xf32, #tpu.memory_space<smem>>
    %87 = vector.broadcast %86 : f32 to vector<8x512xf32>
    %88 = arith.mulf %87, %0 : vector<8x512xf32>
    %c7_23 = arith.constant 7 : index
    %89 = memref.load %arg3[%c7_23] : memref<32xf32, #tpu.memory_space<smem>>
    %90 = vector.broadcast %89 : f32 to vector<8x512xf32>
    %91 = arith.addf %88, %90 : vector<8x512xf32>
    %cst_24 = arith.constant 0.000000e+00 : f32
    %92 = vector.broadcast %cst_24 : f32 to vector<8x512xf32>
    %93 = arith.maximumf %91, %92 : vector<8x512xf32>
    %c7_25 = arith.constant 7 : index
    %94 = memref.load %arg4[%c7_25] : memref<32xf32, #tpu.memory_space<smem>>
    %95 = vector.broadcast %94 : f32 to vector<8x512xf32>
    %96 = arith.mulf %95, %93 : vector<8x512xf32>
    %97 = arith.addf %85, %96 : vector<8x512xf32>
    %c8 = arith.constant 8 : index
    %98 = memref.load %arg2[%c8] : memref<32xf32, #tpu.memory_space<smem>>
    %99 = vector.broadcast %98 : f32 to vector<8x512xf32>
    %100 = arith.mulf %99, %0 : vector<8x512xf32>
    %c8_26 = arith.constant 8 : index
    %101 = memref.load %arg3[%c8_26] : memref<32xf32, #tpu.memory_space<smem>>
    %102 = vector.broadcast %101 : f32 to vector<8x512xf32>
    %103 = arith.addf %100, %102 : vector<8x512xf32>
    %cst_27 = arith.constant 0.000000e+00 : f32
    %104 = vector.broadcast %cst_27 : f32 to vector<8x512xf32>
    %105 = arith.maximumf %103, %104 : vector<8x512xf32>
    %c8_28 = arith.constant 8 : index
    %106 = memref.load %arg4[%c8_28] : memref<32xf32, #tpu.memory_space<smem>>
    %107 = vector.broadcast %106 : f32 to vector<8x512xf32>
    %108 = arith.mulf %107, %105 : vector<8x512xf32>
    %109 = arith.addf %97, %108 : vector<8x512xf32>
    %c9 = arith.constant 9 : index
    %110 = memref.load %arg2[%c9] : memref<32xf32, #tpu.memory_space<smem>>
    %111 = vector.broadcast %110 : f32 to vector<8x512xf32>
    %112 = arith.mulf %111, %0 : vector<8x512xf32>
    %c9_29 = arith.constant 9 : index
    %113 = memref.load %arg3[%c9_29] : memref<32xf32, #tpu.memory_space<smem>>
    %114 = vector.broadcast %113 : f32 to vector<8x512xf32>
    %115 = arith.addf %112, %114 : vector<8x512xf32>
    %cst_30 = arith.constant 0.000000e+00 : f32
    %116 = vector.broadcast %cst_30 : f32 to vector<8x512xf32>
    %117 = arith.maximumf %115, %116 : vector<8x512xf32>
    %c9_31 = arith.constant 9 : index
    %118 = memref.load %arg4[%c9_31] : memref<32xf32, #tpu.memory_space<smem>>
    %119 = vector.broadcast %118 : f32 to vector<8x512xf32>
    %120 = arith.mulf %119, %117 : vector<8x512xf32>
    %121 = arith.addf %109, %120 : vector<8x512xf32>
    %c10 = arith.constant 10 : index
    %122 = memref.load %arg2[%c10] : memref<32xf32, #tpu.memory_space<smem>>
    %123 = vector.broadcast %122 : f32 to vector<8x512xf32>
    %124 = arith.mulf %123, %0 : vector<8x512xf32>
    %c10_32 = arith.constant 10 : index
    %125 = memref.load %arg3[%c10_32] : memref<32xf32, #tpu.memory_space<smem>>
    %126 = vector.broadcast %125 : f32 to vector<8x512xf32>
    %127 = arith.addf %124, %126 : vector<8x512xf32>
    %cst_33 = arith.constant 0.000000e+00 : f32
    %128 = vector.broadcast %cst_33 : f32 to vector<8x512xf32>
    %129 = arith.maximumf %127, %128 : vector<8x512xf32>
    %c10_34 = arith.constant 10 : index
    %130 = memref.load %arg4[%c10_34] : memref<32xf32, #tpu.memory_space<smem>>
    %131 = vector.broadcast %130 : f32 to vector<8x512xf32>
    %132 = arith.mulf %131, %129 : vector<8x512xf32>
    %133 = arith.addf %121, %132 : vector<8x512xf32>
    %c11 = arith.constant 11 : index
    %134 = memref.load %arg2[%c11] : memref<32xf32, #tpu.memory_space<smem>>
    %135 = vector.broadcast %134 : f32 to vector<8x512xf32>
    %136 = arith.mulf %135, %0 : vector<8x512xf32>
    %c11_35 = arith.constant 11 : index
    %137 = memref.load %arg3[%c11_35] : memref<32xf32, #tpu.memory_space<smem>>
    %138 = vector.broadcast %137 : f32 to vector<8x512xf32>
    %139 = arith.addf %136, %138 : vector<8x512xf32>
    %cst_36 = arith.constant 0.000000e+00 : f32
    %140 = vector.broadcast %cst_36 : f32 to vector<8x512xf32>
    %141 = arith.maximumf %139, %140 : vector<8x512xf32>
    %c11_37 = arith.constant 11 : index
    %142 = memref.load %arg4[%c11_37] : memref<32xf32, #tpu.memory_space<smem>>
    %143 = vector.broadcast %142 : f32 to vector<8x512xf32>
    %144 = arith.mulf %143, %141 : vector<8x512xf32>
    %145 = arith.addf %133, %144 : vector<8x512xf32>
    %c12 = arith.constant 12 : index
    %146 = memref.load %arg2[%c12] : memref<32xf32, #tpu.memory_space<smem>>
    %147 = vector.broadcast %146 : f32 to vector<8x512xf32>
    %148 = arith.mulf %147, %0 : vector<8x512xf32>
    %c12_38 = arith.constant 12 : index
    %149 = memref.load %arg3[%c12_38] : memref<32xf32, #tpu.memory_space<smem>>
    %150 = vector.broadcast %149 : f32 to vector<8x512xf32>
    %151 = arith.addf %148, %150 : vector<8x512xf32>
    %cst_39 = arith.constant 0.000000e+00 : f32
    %152 = vector.broadcast %cst_39 : f32 to vector<8x512xf32>
    %153 = arith.maximumf %151, %152 : vector<8x512xf32>
    %c12_40 = arith.constant 12 : index
    %154 = memref.load %arg4[%c12_40] : memref<32xf32, #tpu.memory_space<smem>>
    %155 = vector.broadcast %154 : f32 to vector<8x512xf32>
    %156 = arith.mulf %155, %153 : vector<8x512xf32>
    %157 = arith.addf %145, %156 : vector<8x512xf32>
    %c13 = arith.constant 13 : index
    %158 = memref.load %arg2[%c13] : memref<32xf32, #tpu.memory_space<smem>>
    %159 = vector.broadcast %158 : f32 to vector<8x512xf32>
    %160 = arith.mulf %159, %0 : vector<8x512xf32>
    %c13_41 = arith.constant 13 : index
    %161 = memref.load %arg3[%c13_41] : memref<32xf32, #tpu.memory_space<smem>>
    %162 = vector.broadcast %161 : f32 to vector<8x512xf32>
    %163 = arith.addf %160, %162 : vector<8x512xf32>
    %cst_42 = arith.constant 0.000000e+00 : f32
    %164 = vector.broadcast %cst_42 : f32 to vector<8x512xf32>
    %165 = arith.maximumf %163, %164 : vector<8x512xf32>
    %c13_43 = arith.constant 13 : index
    %166 = memref.load %arg4[%c13_43] : memref<32xf32, #tpu.memory_space<smem>>
    %167 = vector.broadcast %166 : f32 to vector<8x512xf32>
    %168 = arith.mulf %167, %165 : vector<8x512xf32>
    %169 = arith.addf %157, %168 : vector<8x512xf32>
    %c14 = arith.constant 14 : index
    %170 = memref.load %arg2[%c14] : memref<32xf32, #tpu.memory_space<smem>>
    %171 = vector.broadcast %170 : f32 to vector<8x512xf32>
    %172 = arith.mulf %171, %0 : vector<8x512xf32>
    %c14_44 = arith.constant 14 : index
    %173 = memref.load %arg3[%c14_44] : memref<32xf32, #tpu.memory_space<smem>>
    %174 = vector.broadcast %173 : f32 to vector<8x512xf32>
    %175 = arith.addf %172, %174 : vector<8x512xf32>
    %cst_45 = arith.constant 0.000000e+00 : f32
    %176 = vector.broadcast %cst_45 : f32 to vector<8x512xf32>
    %177 = arith.maximumf %175, %176 : vector<8x512xf32>
    %c14_46 = arith.constant 14 : index
    %178 = memref.load %arg4[%c14_46] : memref<32xf32, #tpu.memory_space<smem>>
    %179 = vector.broadcast %178 : f32 to vector<8x512xf32>
    %180 = arith.mulf %179, %177 : vector<8x512xf32>
    %181 = arith.addf %169, %180 : vector<8x512xf32>
    %c15 = arith.constant 15 : index
    %182 = memref.load %arg2[%c15] : memref<32xf32, #tpu.memory_space<smem>>
    %183 = vector.broadcast %182 : f32 to vector<8x512xf32>
    %184 = arith.mulf %183, %0 : vector<8x512xf32>
    %c15_47 = arith.constant 15 : index
    %185 = memref.load %arg3[%c15_47] : memref<32xf32, #tpu.memory_space<smem>>
    %186 = vector.broadcast %185 : f32 to vector<8x512xf32>
    %187 = arith.addf %184, %186 : vector<8x512xf32>
    %cst_48 = arith.constant 0.000000e+00 : f32
    %188 = vector.broadcast %cst_48 : f32 to vector<8x512xf32>
    %189 = arith.maximumf %187, %188 : vector<8x512xf32>
    %c15_49 = arith.constant 15 : index
    %190 = memref.load %arg4[%c15_49] : memref<32xf32, #tpu.memory_space<smem>>
    %191 = vector.broadcast %190 : f32 to vector<8x512xf32>
    %192 = arith.mulf %191, %189 : vector<8x512xf32>
    %193 = arith.addf %181, %192 : vector<8x512xf32>
    %c16 = arith.constant 16 : index
    %194 = memref.load %arg2[%c16] : memref<32xf32, #tpu.memory_space<smem>>
    %195 = vector.broadcast %194 : f32 to vector<8x512xf32>
    %196 = arith.mulf %195, %0 : vector<8x512xf32>
    %c16_50 = arith.constant 16 : index
    %197 = memref.load %arg3[%c16_50] : memref<32xf32, #tpu.memory_space<smem>>
    %198 = vector.broadcast %197 : f32 to vector<8x512xf32>
    %199 = arith.addf %196, %198 : vector<8x512xf32>
    %cst_51 = arith.constant 0.000000e+00 : f32
    %200 = vector.broadcast %cst_51 : f32 to vector<8x512xf32>
    %201 = arith.maximumf %199, %200 : vector<8x512xf32>
    %c16_52 = arith.constant 16 : index
    %202 = memref.load %arg4[%c16_52] : memref<32xf32, #tpu.memory_space<smem>>
    %203 = vector.broadcast %202 : f32 to vector<8x512xf32>
    %204 = arith.mulf %203, %201 : vector<8x512xf32>
    %205 = arith.addf %193, %204 : vector<8x512xf32>
    %c17 = arith.constant 17 : index
    %206 = memref.load %arg2[%c17] : memref<32xf32, #tpu.memory_space<smem>>
    %207 = vector.broadcast %206 : f32 to vector<8x512xf32>
    %208 = arith.mulf %207, %0 : vector<8x512xf32>
    %c17_53 = arith.constant 17 : index
    %209 = memref.load %arg3[%c17_53] : memref<32xf32, #tpu.memory_space<smem>>
    %210 = vector.broadcast %209 : f32 to vector<8x512xf32>
    %211 = arith.addf %208, %210 : vector<8x512xf32>
    %cst_54 = arith.constant 0.000000e+00 : f32
    %212 = vector.broadcast %cst_54 : f32 to vector<8x512xf32>
    %213 = arith.maximumf %211, %212 : vector<8x512xf32>
    %c17_55 = arith.constant 17 : index
    %214 = memref.load %arg4[%c17_55] : memref<32xf32, #tpu.memory_space<smem>>
    %215 = vector.broadcast %214 : f32 to vector<8x512xf32>
    %216 = arith.mulf %215, %213 : vector<8x512xf32>
    %217 = arith.addf %205, %216 : vector<8x512xf32>
    %c18 = arith.constant 18 : index
    %218 = memref.load %arg2[%c18] : memref<32xf32, #tpu.memory_space<smem>>
    %219 = vector.broadcast %218 : f32 to vector<8x512xf32>
    %220 = arith.mulf %219, %0 : vector<8x512xf32>
    %c18_56 = arith.constant 18 : index
    %221 = memref.load %arg3[%c18_56] : memref<32xf32, #tpu.memory_space<smem>>
    %222 = vector.broadcast %221 : f32 to vector<8x512xf32>
    %223 = arith.addf %220, %222 : vector<8x512xf32>
    %cst_57 = arith.constant 0.000000e+00 : f32
    %224 = vector.broadcast %cst_57 : f32 to vector<8x512xf32>
    %225 = arith.maximumf %223, %224 : vector<8x512xf32>
    %c18_58 = arith.constant 18 : index
    %226 = memref.load %arg4[%c18_58] : memref<32xf32, #tpu.memory_space<smem>>
    %227 = vector.broadcast %226 : f32 to vector<8x512xf32>
    %228 = arith.mulf %227, %225 : vector<8x512xf32>
    %229 = arith.addf %217, %228 : vector<8x512xf32>
    %c19 = arith.constant 19 : index
    %230 = memref.load %arg2[%c19] : memref<32xf32, #tpu.memory_space<smem>>
    %231 = vector.broadcast %230 : f32 to vector<8x512xf32>
    %232 = arith.mulf %231, %0 : vector<8x512xf32>
    %c19_59 = arith.constant 19 : index
    %233 = memref.load %arg3[%c19_59] : memref<32xf32, #tpu.memory_space<smem>>
    %234 = vector.broadcast %233 : f32 to vector<8x512xf32>
    %235 = arith.addf %232, %234 : vector<8x512xf32>
    %cst_60 = arith.constant 0.000000e+00 : f32
    %236 = vector.broadcast %cst_60 : f32 to vector<8x512xf32>
    %237 = arith.maximumf %235, %236 : vector<8x512xf32>
    %c19_61 = arith.constant 19 : index
    %238 = memref.load %arg4[%c19_61] : memref<32xf32, #tpu.memory_space<smem>>
    %239 = vector.broadcast %238 : f32 to vector<8x512xf32>
    %240 = arith.mulf %239, %237 : vector<8x512xf32>
    %241 = arith.addf %229, %240 : vector<8x512xf32>
    %c20 = arith.constant 20 : index
    %242 = memref.load %arg2[%c20] : memref<32xf32, #tpu.memory_space<smem>>
    %243 = vector.broadcast %242 : f32 to vector<8x512xf32>
    %244 = arith.mulf %243, %0 : vector<8x512xf32>
    %c20_62 = arith.constant 20 : index
    %245 = memref.load %arg3[%c20_62] : memref<32xf32, #tpu.memory_space<smem>>
    %246 = vector.broadcast %245 : f32 to vector<8x512xf32>
    %247 = arith.addf %244, %246 : vector<8x512xf32>
    %cst_63 = arith.constant 0.000000e+00 : f32
    %248 = vector.broadcast %cst_63 : f32 to vector<8x512xf32>
    %249 = arith.maximumf %247, %248 : vector<8x512xf32>
    %c20_64 = arith.constant 20 : index
    %250 = memref.load %arg4[%c20_64] : memref<32xf32, #tpu.memory_space<smem>>
    %251 = vector.broadcast %250 : f32 to vector<8x512xf32>
    %252 = arith.mulf %251, %249 : vector<8x512xf32>
    %253 = arith.addf %241, %252 : vector<8x512xf32>
    %c21 = arith.constant 21 : index
    %254 = memref.load %arg2[%c21] : memref<32xf32, #tpu.memory_space<smem>>
    %255 = vector.broadcast %254 : f32 to vector<8x512xf32>
    %256 = arith.mulf %255, %0 : vector<8x512xf32>
    %c21_65 = arith.constant 21 : index
    %257 = memref.load %arg3[%c21_65] : memref<32xf32, #tpu.memory_space<smem>>
    %258 = vector.broadcast %257 : f32 to vector<8x512xf32>
    %259 = arith.addf %256, %258 : vector<8x512xf32>
    %cst_66 = arith.constant 0.000000e+00 : f32
    %260 = vector.broadcast %cst_66 : f32 to vector<8x512xf32>
    %261 = arith.maximumf %259, %260 : vector<8x512xf32>
    %c21_67 = arith.constant 21 : index
    %262 = memref.load %arg4[%c21_67] : memref<32xf32, #tpu.memory_space<smem>>
    %263 = vector.broadcast %262 : f32 to vector<8x512xf32>
    %264 = arith.mulf %263, %261 : vector<8x512xf32>
    %265 = arith.addf %253, %264 : vector<8x512xf32>
    %c22 = arith.constant 22 : index
    %266 = memref.load %arg2[%c22] : memref<32xf32, #tpu.memory_space<smem>>
    %267 = vector.broadcast %266 : f32 to vector<8x512xf32>
    %268 = arith.mulf %267, %0 : vector<8x512xf32>
    %c22_68 = arith.constant 22 : index
    %269 = memref.load %arg3[%c22_68] : memref<32xf32, #tpu.memory_space<smem>>
    %270 = vector.broadcast %269 : f32 to vector<8x512xf32>
    %271 = arith.addf %268, %270 : vector<8x512xf32>
    %cst_69 = arith.constant 0.000000e+00 : f32
    %272 = vector.broadcast %cst_69 : f32 to vector<8x512xf32>
    %273 = arith.maximumf %271, %272 : vector<8x512xf32>
    %c22_70 = arith.constant 22 : index
    %274 = memref.load %arg4[%c22_70] : memref<32xf32, #tpu.memory_space<smem>>
    %275 = vector.broadcast %274 : f32 to vector<8x512xf32>
    %276 = arith.mulf %275, %273 : vector<8x512xf32>
    %277 = arith.addf %265, %276 : vector<8x512xf32>
    %c23 = arith.constant 23 : index
    %278 = memref.load %arg2[%c23] : memref<32xf32, #tpu.memory_space<smem>>
    %279 = vector.broadcast %278 : f32 to vector<8x512xf32>
    %280 = arith.mulf %279, %0 : vector<8x512xf32>
    %c23_71 = arith.constant 23 : index
    %281 = memref.load %arg3[%c23_71] : memref<32xf32, #tpu.memory_space<smem>>
    %282 = vector.broadcast %281 : f32 to vector<8x512xf32>
    %283 = arith.addf %280, %282 : vector<8x512xf32>
    %cst_72 = arith.constant 0.000000e+00 : f32
    %284 = vector.broadcast %cst_72 : f32 to vector<8x512xf32>
    %285 = arith.maximumf %283, %284 : vector<8x512xf32>
    %c23_73 = arith.constant 23 : index
    %286 = memref.load %arg4[%c23_73] : memref<32xf32, #tpu.memory_space<smem>>
    %287 = vector.broadcast %286 : f32 to vector<8x512xf32>
    %288 = arith.mulf %287, %285 : vector<8x512xf32>
    %289 = arith.addf %277, %288 : vector<8x512xf32>
    %c24 = arith.constant 24 : index
    %290 = memref.load %arg2[%c24] : memref<32xf32, #tpu.memory_space<smem>>
    %291 = vector.broadcast %290 : f32 to vector<8x512xf32>
    %292 = arith.mulf %291, %0 : vector<8x512xf32>
    %c24_74 = arith.constant 24 : index
    %293 = memref.load %arg3[%c24_74] : memref<32xf32, #tpu.memory_space<smem>>
    %294 = vector.broadcast %293 : f32 to vector<8x512xf32>
    %295 = arith.addf %292, %294 : vector<8x512xf32>
    %cst_75 = arith.constant 0.000000e+00 : f32
    %296 = vector.broadcast %cst_75 : f32 to vector<8x512xf32>
    %297 = arith.maximumf %295, %296 : vector<8x512xf32>
    %c24_76 = arith.constant 24 : index
    %298 = memref.load %arg4[%c24_76] : memref<32xf32, #tpu.memory_space<smem>>
    %299 = vector.broadcast %298 : f32 to vector<8x512xf32>
    %300 = arith.mulf %299, %297 : vector<8x512xf32>
    %301 = arith.addf %289, %300 : vector<8x512xf32>
    %c25 = arith.constant 25 : index
    %302 = memref.load %arg2[%c25] : memref<32xf32, #tpu.memory_space<smem>>
    %303 = vector.broadcast %302 : f32 to vector<8x512xf32>
    %304 = arith.mulf %303, %0 : vector<8x512xf32>
    %c25_77 = arith.constant 25 : index
    %305 = memref.load %arg3[%c25_77] : memref<32xf32, #tpu.memory_space<smem>>
    %306 = vector.broadcast %305 : f32 to vector<8x512xf32>
    %307 = arith.addf %304, %306 : vector<8x512xf32>
    %cst_78 = arith.constant 0.000000e+00 : f32
    %308 = vector.broadcast %cst_78 : f32 to vector<8x512xf32>
    %309 = arith.maximumf %307, %308 : vector<8x512xf32>
    %c25_79 = arith.constant 25 : index
    %310 = memref.load %arg4[%c25_79] : memref<32xf32, #tpu.memory_space<smem>>
    %311 = vector.broadcast %310 : f32 to vector<8x512xf32>
    %312 = arith.mulf %311, %309 : vector<8x512xf32>
    %313 = arith.addf %301, %312 : vector<8x512xf32>
    %c26 = arith.constant 26 : index
    %314 = memref.load %arg2[%c26] : memref<32xf32, #tpu.memory_space<smem>>
    %315 = vector.broadcast %314 : f32 to vector<8x512xf32>
    %316 = arith.mulf %315, %0 : vector<8x512xf32>
    %c26_80 = arith.constant 26 : index
    %317 = memref.load %arg3[%c26_80] : memref<32xf32, #tpu.memory_space<smem>>
    %318 = vector.broadcast %317 : f32 to vector<8x512xf32>
    %319 = arith.addf %316, %318 : vector<8x512xf32>
    %cst_81 = arith.constant 0.000000e+00 : f32
    %320 = vector.broadcast %cst_81 : f32 to vector<8x512xf32>
    %321 = arith.maximumf %319, %320 : vector<8x512xf32>
    %c26_82 = arith.constant 26 : index
    %322 = memref.load %arg4[%c26_82] : memref<32xf32, #tpu.memory_space<smem>>
    %323 = vector.broadcast %322 : f32 to vector<8x512xf32>
    %324 = arith.mulf %323, %321 : vector<8x512xf32>
    %325 = arith.addf %313, %324 : vector<8x512xf32>
    %c27 = arith.constant 27 : index
    %326 = memref.load %arg2[%c27] : memref<32xf32, #tpu.memory_space<smem>>
    %327 = vector.broadcast %326 : f32 to vector<8x512xf32>
    %328 = arith.mulf %327, %0 : vector<8x512xf32>
    %c27_83 = arith.constant 27 : index
    %329 = memref.load %arg3[%c27_83] : memref<32xf32, #tpu.memory_space<smem>>
    %330 = vector.broadcast %329 : f32 to vector<8x512xf32>
    %331 = arith.addf %328, %330 : vector<8x512xf32>
    %cst_84 = arith.constant 0.000000e+00 : f32
    %332 = vector.broadcast %cst_84 : f32 to vector<8x512xf32>
    %333 = arith.maximumf %331, %332 : vector<8x512xf32>
    %c27_85 = arith.constant 27 : index
    %334 = memref.load %arg4[%c27_85] : memref<32xf32, #tpu.memory_space<smem>>
    %335 = vector.broadcast %334 : f32 to vector<8x512xf32>
    %336 = arith.mulf %335, %333 : vector<8x512xf32>
    %337 = arith.addf %325, %336 : vector<8x512xf32>
    %c28 = arith.constant 28 : index
    %338 = memref.load %arg2[%c28] : memref<32xf32, #tpu.memory_space<smem>>
    %339 = vector.broadcast %338 : f32 to vector<8x512xf32>
    %340 = arith.mulf %339, %0 : vector<8x512xf32>
    %c28_86 = arith.constant 28 : index
    %341 = memref.load %arg3[%c28_86] : memref<32xf32, #tpu.memory_space<smem>>
    %342 = vector.broadcast %341 : f32 to vector<8x512xf32>
    %343 = arith.addf %340, %342 : vector<8x512xf32>
    %cst_87 = arith.constant 0.000000e+00 : f32
    %344 = vector.broadcast %cst_87 : f32 to vector<8x512xf32>
    %345 = arith.maximumf %343, %344 : vector<8x512xf32>
    %c28_88 = arith.constant 28 : index
    %346 = memref.load %arg4[%c28_88] : memref<32xf32, #tpu.memory_space<smem>>
    %347 = vector.broadcast %346 : f32 to vector<8x512xf32>
    %348 = arith.mulf %347, %345 : vector<8x512xf32>
    %349 = arith.addf %337, %348 : vector<8x512xf32>
    %c29 = arith.constant 29 : index
    %350 = memref.load %arg2[%c29] : memref<32xf32, #tpu.memory_space<smem>>
    %351 = vector.broadcast %350 : f32 to vector<8x512xf32>
    %352 = arith.mulf %351, %0 : vector<8x512xf32>
    %c29_89 = arith.constant 29 : index
    %353 = memref.load %arg3[%c29_89] : memref<32xf32, #tpu.memory_space<smem>>
    %354 = vector.broadcast %353 : f32 to vector<8x512xf32>
    %355 = arith.addf %352, %354 : vector<8x512xf32>
    %cst_90 = arith.constant 0.000000e+00 : f32
    %356 = vector.broadcast %cst_90 : f32 to vector<8x512xf32>
    %357 = arith.maximumf %355, %356 : vector<8x512xf32>
    %c29_91 = arith.constant 29 : index
    %358 = memref.load %arg4[%c29_91] : memref<32xf32, #tpu.memory_space<smem>>
    %359 = vector.broadcast %358 : f32 to vector<8x512xf32>
    %360 = arith.mulf %359, %357 : vector<8x512xf32>
    %361 = arith.addf %349, %360 : vector<8x512xf32>
    %c30 = arith.constant 30 : index
    %362 = memref.load %arg2[%c30] : memref<32xf32, #tpu.memory_space<smem>>
    %363 = vector.broadcast %362 : f32 to vector<8x512xf32>
    %364 = arith.mulf %363, %0 : vector<8x512xf32>
    %c30_92 = arith.constant 30 : index
    %365 = memref.load %arg3[%c30_92] : memref<32xf32, #tpu.memory_space<smem>>
    %366 = vector.broadcast %365 : f32 to vector<8x512xf32>
    %367 = arith.addf %364, %366 : vector<8x512xf32>
    %cst_93 = arith.constant 0.000000e+00 : f32
    %368 = vector.broadcast %cst_93 : f32 to vector<8x512xf32>
    %369 = arith.maximumf %367, %368 : vector<8x512xf32>
    %c30_94 = arith.constant 30 : index
    %370 = memref.load %arg4[%c30_94] : memref<32xf32, #tpu.memory_space<smem>>
    %371 = vector.broadcast %370 : f32 to vector<8x512xf32>
    %372 = arith.mulf %371, %369 : vector<8x512xf32>
    %373 = arith.addf %361, %372 : vector<8x512xf32>
    %c31 = arith.constant 31 : index
    %374 = memref.load %arg2[%c31] : memref<32xf32, #tpu.memory_space<smem>>
    %375 = vector.broadcast %374 : f32 to vector<8x512xf32>
    %376 = arith.mulf %375, %0 : vector<8x512xf32>
    %c31_95 = arith.constant 31 : index
    %377 = memref.load %arg3[%c31_95] : memref<32xf32, #tpu.memory_space<smem>>
    %378 = vector.broadcast %377 : f32 to vector<8x512xf32>
    %379 = arith.addf %376, %378 : vector<8x512xf32>
    %cst_96 = arith.constant 0.000000e+00 : f32
    %380 = vector.broadcast %cst_96 : f32 to vector<8x512xf32>
    %381 = arith.maximumf %379, %380 : vector<8x512xf32>
    %c31_97 = arith.constant 31 : index
    %382 = memref.load %arg4[%c31_97] : memref<32xf32, #tpu.memory_space<smem>>
    %383 = vector.broadcast %382 : f32 to vector<8x512xf32>
    %384 = arith.mulf %383, %381 : vector<8x512xf32>
    %385 = arith.addf %373, %384 : vector<8x512xf32>
    %c0_98 = arith.constant 0 : index
    %386 = memref.load %arg5[%c0_98] : memref<1xf32, #tpu.memory_space<smem>>
    %387 = vector.broadcast %386 : f32 to vector<8x512xf32>
    %388 = arith.addf %385, %387 : vector<8x512xf32>
    %c0_99 = arith.constant 0 : index
    %c0_100 = arith.constant 0 : index
    %389 = vector.load %arg6[%c0_99, %c0_100] : memref<8x512xf32, #tpu.memory_space<vmem>>, vector<8x512xf32>
    tpu.vector_store %arg6[%c0_99, %c0_100], %388 {strides = array<i32>} : memref<8x512xf32, #tpu.memory_space<vmem>>, vector<8x512xf32>,
    return
  }
  func.func @transform_0(%arg0: i32) -> (i32, i32) {
    %c0_i32 = arith.constant 0 : i32
    %c0_i32_0 = arith.constant 0 : i32
    return %arg0, %c0_i32 : i32, i32
  }
  func.func @transform_1(%arg0: i32) -> i32 {
    %c0_i32 = arith.constant 0 : i32
    %c0_i32_0 = arith.constant 0 : i32
    return %c0_i32 : i32
  }
  func.func @transform_2(%arg0: i32) -> i32 {
    %c0_i32 = arith.constant 0 : i32
    %c0_i32_0 = arith.constant 0 : i32
    return %c0_i32 : i32
  }
  func.func @transform_3(%arg0: i32) -> i32 {
    %c0_i32 = arith.constant 0 : i32
    %c0_i32_0 = arith.constant 0 : i32
    return %c0_i32 : i32
  }
  func.func @transform_4(%arg0: i32) -> i32 {
    %c0_i32 = arith.constant 0 : i32
    %c0_i32_0 = arith.constant 0 : i32
    return %c0_i32 : i32
  }
  func.func @transform_5(%arg0: i32) -> (i32, i32) {
    %c0_i32 = arith.constant 0 : i32
    %c0_i32_0 = arith.constant 0 : i32
    return %arg0, %c0_i32 : i32, i32
  }
}

</mosaic_0001>

<bundles_post_ra>
// kernel: network_forward.1
= control target key start
LH: loop header
LB: loop body
LE: loop exit
PB: predicated region body
PF: predicated region fallthrough
CT: control target
= control target key end

     0   :  { %11 = vsyncpa [#allocation4], 0  ;;  %s1547_s0 = inlined_call_operand.vmem [shape: f32[8,512], index: 0, kind: input, shape index: {}]   ;;  %s1548_s1 = inlined_call_operand.vmem [shape: f32[32], index: 1, kind: input, shape index: {}]   ;;  %s1549_s2 = inlined_call_operand.vmem [shape: f32[32], index: 2, kind: input, shape index: {}]   ;;  %s1550_s3 = inlined_call_operand.vmem [shape: f32[32], index: 3, kind: input, shape index: {}]   ;;  %s1551_s4 = inlined_call_operand.<no memory space> [shape: f32[1], index: 4, kind: input, shape index: {}]   ;;  %s1552_s5 = inlined_call_operand.vmem [shape: f32[8,512], index: 5, kind: output, shape index: {}]  }
   0x1   :  { %12 = vsyncpa [#allocation6], 0  ;;  %s31_s20 = sshll.u32 %s1549_s2, 4  ;;  %s21_s23 = sshll.u32 %s1548_s1, 4  ;;  %s32_s20 = int_to_ptr.vmem [resolvable:$true] %s31_s20  ;;  %s22_s23 = int_to_ptr.vmem [resolvable:$true] %s21_s23 }
   0x2   :  { %s1009_s24 = scalar_lea.vmem %s32_s20, 16  ;;  %p1014_p1 = scmp.lt.s32.totalorder %s32_s20, %s32_s20 }
   0x3   :  { %p1010_p0 = scmp.ne.s32.totalorder %s32_s20, %s1009_s24  ;;  %p1015_p2 = scmp.lt.s32.totalorder %s1009_s24, %s1009_s24 }
   0x5   :  { %p1016_p3 = por %p1015_p2, %p1014_p1 }
   0x7   :  { %p1017_p4 = pnand %p1016_p3, %p1010_p0 }
   0x9   :  { %1020 = shalt.err (!%p1017_p4)
}
   0xa   :  { %s1049_s25 = smov [#allocation5]   ;;  %s1021_s26 = scalar_lea.vmem %s22_s23, 16 }
   0xb   :  { %34 = dma.vmem_to_smem %s32_s20, 16, %s1049_s25, [#allocation6]  }
   0xc   :  { %p1022_p5 = scmp.ne.s32.totalorder %s22_s23, %s1021_s26  ;;  %p1026_p6 = scmp.lt.s32.totalorder %s22_s23, %s22_s23 }
   0xd   :  { %p1027_p7 = scmp.lt.s32.totalorder %s1021_s26, %s1021_s26 }
   0xf   :  { %p1028_p8 = por %p1027_p7, %p1026_p6 }
  0x11   :  { %p1029_p9 = pnand %p1028_p8, %p1022_p5 }
  0x13   :  { %1032 = shalt.err (!%p1029_p9)
}
  0x14   :  { %s1050_s2 = smov [#allocation3]   ;;  %s41_s28 = sshll.u32 %s1550_s3, 4  ;;  %s42_s28 = int_to_ptr.vmem [resolvable:$true] %s41_s28 }
  0x15   :  { %24 = dma.vmem_to_smem %s22_s23, 16, %s1050_s2, [#allocation4]  }
  0x16   :  { %s1033_s29 = scalar_lea.vmem %s42_s28, 16  ;;  %p1038_p11 = scmp.lt.s32.totalorder %s42_s28, %s42_s28 }
  0x17   :  { %p1034_p10 = scmp.ne.s32.totalorder %s42_s28, %s1033_s29  ;;  %p1039_p12 = scmp.lt.s32.totalorder %s1033_s29, %s1033_s29 }
  0x19   :  { %p1040_p13 = por %p1039_p12, %p1038_p11 }
  0x1b   :  { %p1041_p0 = pnand %p1040_p13, %p1034_p10 }
  0x1d   :  { %1044 = shalt.err (!%p1041_p0)
}
  0x1e   :  { %s1051_s30 = smov [#allocation7]  }
  0x1f   :  { %44 = dma.vmem_to_smem %s42_s28, 16, %s1051_s30, [#allocation6]  }
  0x20   :  { %1045 = dma.done.wait [#allocation4], 16  }
  0x21   :  { %1046 = vsyncadd [#allocation4], 4294967280 }
  0x22   :  { %1047 = dma.done.wait [#allocation6], 32  }
  0x23   :  { %1048 = vsyncadd [#allocation6], 4294967264 }
  0x24   :  { %56 = sfence }
  0x25   :  { %s61_s6 = sld [smem:[#allocation3]]  ;;  %s909_s9 = sld [smem:[#allocation3 + $0x1]]  ;;  %v1094_v0 = vld [vmem:[%s1547_s0] sm:$0xff]  ;;  %v1099_v1 = vld [vmem:[%s1547_s0 + $0x8] sm:$0xff]  ;;  %v1104_v2 = vld [vmem:[%s1547_s0 + $0x10] sm:$0xff] }
  0x26   :  { %s67_s7 = sld [smem:[#allocation5]]  ;;  %s910_s3 = sld [smem:[#allocation5 + $0x1]]  ;;  %v1109_v3 = vld [vmem:[%s1547_s0 + $0x18] sm:$0xff] }
  0x27   :  { %s77_s8 = sld [smem:[#allocation7]]  ;;  %s1111_s18 = sld [smem:[#allocation7 + $0x1]] }
  0x28   :  { %s1113_s19 = sld [smem:[#allocation3 + $0x2]]  ;;  %s1127_s22 = sld [smem:[#allocation3 + $0x3]] }
  0x29   :  { %s1119_s20 = sld [smem:[#allocation5 + $0x2]]  ;;  %s1129_s23 = sld [smem:[#allocation5 + $0x3]] }
  0x2a   :  { %s1121_s21 = sld [smem:[#allocation7 + $0x2]]  ;;  %s1131_s24 = sld [smem:[#allocation7 + $0x3]] }
  0x2b   :  { %v62_v4 = vstv %s61_s6  ;;  %v88_v11 = vstv %s909_s9  ;;  %s1133_s25 = sld [smem:[#allocation3 + $0x4]]  ;;  %s1151_s1 = sld [smem:[#allocation3 + $0x5]] }
  0x2c   :  { %v63_v5 = vmul.f32 %v62_v4, %v1094_v0  ;;  %v64_v6 = vmul.f32 %v62_v4, %v1099_v1  ;;  %v65_v7 = vmul.f32 %v62_v4, %v1104_v2  ;;  %v66_v8 = vmul.f32 %v62_v4, %v1109_v3  ;;  %s1143_s26 = sld [smem:[#allocation5 + $0x4]]  ;;  %s1153_s27 = sld [smem:[#allocation5 + $0x5]] }
  0x2d   :  { %v68_v9 = vstv %s67_s7  ;;  %v78_v10 = vstv %s77_s8  ;;  %v94_v12 = vstv %s910_s3  ;;  %v89_v17 = vmul.f32 %v88_v11, %v1094_v0  ;;  %s1149_s2 = sld [smem:[#allocation7 + $0x4]]  ;;  %s1167_s28 = sld [smem:[#allocation7 + $0x5]] }
  0x2e   :  { %v69_v13 = vadd.f32 %v68_v9, %v63_v5  ;;  %v70_v14 = vadd.f32 %v68_v9, %v64_v6  ;;  %v71_v15 = vadd.f32 %v68_v9, %v65_v7  ;;  %v72_v16 = vadd.f32 %v68_v9, %v66_v8  ;;  %s1169_s29 = sld [smem:[#allocation3 + $0x6]]  ;;  %s1179_s7 = sld [smem:[#allocation3 + $0x7]] }
  0x2f   :  { %v90_v18 = vmul.f32 %v88_v11, %v1099_v1  ;;  %v91_v19 = vmul.f32 %v88_v11, %v1104_v2  ;;  %v92_v20 = vmul.f32 %v88_v11, %v1109_v3  ;;  %v95_v25 = vadd.f32 %v94_v12, %v89_v17  ;;  %s1171_s30 = sld [smem:[#allocation5 + $0x6]]  ;;  %s1181_s8 = sld [smem:[#allocation5 + $0x7]] }
  0x30   :  { %v73_v21 = vmax.f32 %v69_v13, 0.0  ;;  %v74_v22 = vmax.f32 %v70_v14, 0.0  ;;  %v75_v23 = vmax.f32 %v71_v15, 0.0  ;;  %v76_v24 = vmax.f32 %v72_v16, 0.0  ;;  %s1173_s6 = sld [smem:[#allocation7 + $0x6]]  ;;  %s1183_s9 = sld [smem:[#allocation7 + $0x7]] }
  0x31   :  { %v96_v26 = vadd.f32 %v94_v12, %v90_v18  ;;  %v97_v27 = vadd.f32 %v94_v12, %v91_v19  ;;  %v98_v28 = vadd.f32 %v94_v12, %v92_v20  ;;  %v99_v33 = vmax.f32 %v95_v25, 0.0  ;;  %s1185_s3 = sld [smem:[#allocation3 + $0x8]]  ;;  %s1203_s12 = sld [smem:[#allocation3 + $0x9]] }
  0x32   :  { %v79_v29 = vmul.f32 %v78_v10, %v73_v21  ;;  %v80_v30 = vmul.f32 %v78_v10, %v74_v22  ;;  %v81_v31 = vmul.f32 %v78_v10, %v75_v23  ;;  %v82_v32 = vmul.f32 %v78_v10, %v76_v24  ;;  %s1195_s10 = sld [smem:[#allocation5 + $0x8]]  ;;  %s1205_s13 = sld [smem:[#allocation5 + $0x9]] }
  0x33   :  { %v100_v34 = vmax.f32 %v96_v26, 0.0  ;;  %v101_v35 = vmax.f32 %v97_v27, 0.0  ;;  %v102_v36 = vmax.f32 %v98_v28, 0.0  ;;  %v104_v37 = vstv %s1111_s18  ;;  %s1201_s11 = sld [smem:[#allocation7 + $0x8]]  ;;  %s1219_s14 = sld [smem:[#allocation7 + $0x9]] }
  0x34   :  { %v114_v38 = vstv %s1113_s19  ;;  %v120_v39 = vstv %s1119_s20  ;;  %v130_v40 = vstv %s1121_s21  ;;  %v105_v41 = vmul.f32 %v104_v37, %v99_v33  ;;  %s1221_s15 = sld [smem:[#allocation3 + $0xa]]  ;;  %s1231_s18 = sld [smem:[#allocation3 + $0xb]] }
  0x35   :  { %v106_v42 = vmul.f32 %v104_v37, %v100_v34  ;;  %v107_v43 = vmul.f32 %v104_v37, %v101_v35  ;;  %v108_v44 = vmul.f32 %v104_v37, %v102_v36  ;;  %v115_v45 = vmul.f32 %v114_v38, %v1094_v0  ;;  %s1223_s16 = sld [smem:[#allocation5 + $0xa]]  ;;  %s1233_s19 = sld [smem:[#allocation5 + $0xb]] }
  0x36   :  { %v116_v46 = vmul.f32 %v114_v38, %v1099_v1  ;;  %v117_v47 = vmul.f32 %v114_v38, %v1104_v2  ;;  %v118_v48 = vmul.f32 %v114_v38, %v1109_v3  ;;  %v109_v49 = vadd.f32 %v105_v41, %v79_v29  ;;  %s1225_s17 = sld [smem:[#allocation7 + $0xa]]  ;;  %s1235_s20 = sld [smem:[#allocation7 + $0xb]] }
  0x37   :  { %v110_v50 = vadd.f32 %v106_v42, %v80_v30  ;;  %v111_v51 = vadd.f32 %v107_v43, %v81_v31  ;;  %v112_v52 = vadd.f32 %v108_v44, %v82_v32  ;;  %v121_v53 = vadd.f32 %v120_v39, %v115_v45  ;;  %s1237_s21 = sld [smem:[#allocation3 + $0xc]] }
  0x38   :  { %v122_v54 = vadd.f32 %v120_v39, %v116_v46  ;;  %v123_v55 = vadd.f32 %v120_v39, %v117_v47  ;;  %v124_v56 = vadd.f32 %v120_v39, %v118_v48  ;;  %v140_v57 = vstv %s1127_s22  ;;  %s1247_s22 = sld [smem:[#allocation5 + $0xc]] }
  0x39   :  { %v146_v58 = vstv %s1129_s23  ;;  %v156_v59 = vstv %s1131_s24  ;;  %v166_v60 = vstv %s1133_s25  ;;  %v125_v61 = vmax.f32 %v121_v53, 0.0  ;;  %s1253_s23 = sld [smem:[#allocation7 + $0xc]]  ;;  %s1255_s24 = sld [smem:[#allocation3 + $0xd]] }
  0x3a   :  { %v126_v62 = vmax.f32 %v122_v54, 0.0  ;;  %v127_v63 = vmax.f32 %v123_v55, 0.0  ;;  %v128_v4 = vmax.f32 %v124_v56, 0.0  ;;  %v141_v5 = vmul.f32 %v140_v57, %v1094_v0  ;;  %s1257_s25 = sld [smem:[#allocation5 + $0xd]] }
  0x3b   :  { %v142_v6 = vmul.f32 %v140_v57, %v1099_v1  ;;  %v143_v7 = vmul.f32 %v140_v57, %v1104_v2  ;;  %v144_v8 = vmul.f32 %v140_v57, %v1109_v3  ;;  %v131_v9 = vmul.f32 %v130_v40, %v125_v61 }
  0x3c   :  { %v132_v10 = vmul.f32 %v130_v40, %v126_v62  ;;  %v133_v11 = vmul.f32 %v130_v40, %v127_v63  ;;  %v134_v12 = vmul.f32 %v130_v40, %v128_v4  ;;  %v147_v13 = vadd.f32 %v146_v58, %v141_v5 }
  0x3d   :  { %v148_v14 = vadd.f32 %v146_v58, %v142_v6  ;;  %v149_v15 = vadd.f32 %v146_v58, %v143_v7  ;;  %v150_v16 = vadd.f32 %v146_v58, %v144_v8  ;;  %v135_v17 = vadd.f32 %v131_v9, %v109_v49 }
  0x3e   :  { %v136_v18 = vadd.f32 %v132_v10, %v110_v50  ;;  %v137_v19 = vadd.f32 %v133_v11, %v111_v51  ;;  %v138_v20 = vadd.f32 %v134_v12, %v112_v52  ;;  %v151_v21 = vmax.f32 %v147_v13, 0.0 }
  0x3f   :  { %v152_v22 = vmax.f32 %v148_v14, 0.0  ;;  %v153_v23 = vmax.f32 %v149_v15, 0.0  ;;  %v154_v24 = vmax.f32 %v150_v16, 0.0  ;;  %v167_v25 = vmul.f32 %v166_v60, %v1094_v0 }
  0x40   :  { %v168_v26 = vmul.f32 %v166_v60, %v1099_v1  ;;  %v169_v27 = vmul.f32 %v166_v60, %v1104_v2  ;;  %v170_v28 = vmul.f32 %v166_v60, %v1109_v3  ;;  %v157_v29 = vmul.f32 %v156_v59, %v151_v21 }
  0x41   :  { %v158_v30 = vmul.f32 %v156_v59, %v152_v22  ;;  %v159_v31 = vmul.f32 %v156_v59, %v153_v23  ;;  %v160_v32 = vmul.f32 %v156_v59, %v154_v24  ;;  %v172_v33 = vstv %s1143_s26  ;;  %s1271_s26 = sld [smem:[#allocation7 + $0xd]] }
  0x42   :  { %v182_v34 = vstv %s1149_s2  ;;  %v192_v35 = vstv %s1151_s1  ;;  %v198_v36 = vstv %s1153_s27  ;;  %v161_v37 = vadd.f32 %v157_v29, %v135_v17  ;;  %s1273_s2 = sld [smem:[#allocation3 + $0xe]] }
  0x43   :  { %v162_v38 = vadd.f32 %v158_v30, %v136_v18  ;;  %v163_v39 = vadd.f32 %v159_v31, %v137_v19  ;;  %v164_v40 = vadd.f32 %v160_v32, %v138_v20  ;;  %v173_v41 = vadd.f32 %v172_v33, %v167_v25  ;;  %s1275_s1 = sld [smem:[#allocation5 + $0xe]] }
  0x44   :  { %v174_v42 = vadd.f32 %v172_v33, %v168_v26  ;;  %v175_v43 = vadd.f32 %v172_v33, %v169_v27  ;;  %v176_v44 = vadd.f32 %v172_v33, %v170_v28  ;;  %v193_v45 = vmul.f32 %v192_v35, %v1094_v0  ;;  %s1277_s27 = sld [smem:[#allocation7 + $0xe]] }
  0x45   :  { %v194_v46 = vmul.f32 %v192_v35, %v1099_v1  ;;  %v195_v47 = vmul.f32 %v192_v35, %v1104_v2  ;;  %v196_v48 = vmul.f32 %v192_v35, %v1109_v3  ;;  %v177_v49 = vmax.f32 %v173_v41, 0.0 }
  0x46   :  { %v178_v50 = vmax.f32 %v174_v42, 0.0  ;;  %v179_v51 = vmax.f32 %v175_v43, 0.0  ;;  %v180_v52 = vmax.f32 %v176_v44, 0.0  ;;  %v199_v53 = vadd.f32 %v198_v36, %v193_v45 }
  0x47   :  { %v200_v54 = vadd.f32 %v198_v36, %v194_v46  ;;  %v201_v55 = vadd.f32 %v198_v36, %v195_v47  ;;  %v202_v56 = vadd.f32 %v198_v36, %v196_v48  ;;  %v183_v57 = vmul.f32 %v182_v34, %v177_v49 }
  0x48   :  { %v184_v58 = vmul.f32 %v182_v34, %v178_v50  ;;  %v185_v59 = vmul.f32 %v182_v34, %v179_v51  ;;  %v186_v60 = vmul.f32 %v182_v34, %v180_v52  ;;  %v203_v61 = vmax.f32 %v199_v53, 0.0 }
  0x49   :  { %v204_v62 = vmax.f32 %v200_v54, 0.0  ;;  %v205_v63 = vmax.f32 %v201_v55, 0.0  ;;  %v206_v4 = vmax.f32 %v202_v56, 0.0  ;;  %v187_v5 = vadd.f32 %v183_v57, %v161_v37 }
  0x4a   :  { %v188_v6 = vadd.f32 %v184_v58, %v162_v38  ;;  %v189_v7 = vadd.f32 %v185_v59, %v163_v39  ;;  %v190_v8 = vadd.f32 %v186_v60, %v164_v40  ;;  %v208_v9 = vstv %s1167_s28  ;;  %s1283_s28 = sld [smem:[#allocation3 + $0xf]] }
  0x4b   :  { %v218_v10 = vstv %s1169_s29  ;;  %v224_v11 = vstv %s1171_s30  ;;  %v234_v12 = vstv %s1173_s6  ;;  %v209_v13 = vmul.f32 %v208_v9, %v203_v61  ;;  %s1285_s29 = sld [smem:[#allocation5 + $0xf]]  ;;  %s1289_s6 = sld [smem:[#allocation3 + $0x10]] }
  0x4c   :  { %v210_v14 = vmul.f32 %v208_v9, %v204_v62  ;;  %v211_v15 = vmul.f32 %v208_v9, %v205_v63  ;;  %v212_v16 = vmul.f32 %v208_v9, %v206_v4  ;;  %v219_v17 = vmul.f32 %v218_v10, %v1094_v0  ;;  %s1287_s30 = sld [smem:[#allocation7 + $0xf]] }
  0x4d   :  { %v220_v18 = vmul.f32 %v218_v10, %v1099_v1  ;;  %v221_v19 = vmul.f32 %v218_v10, %v1104_v2  ;;  %v222_v20 = vmul.f32 %v218_v10, %v1109_v3  ;;  %v213_v21 = vadd.f32 %v209_v13, %v187_v5 }
  0x4e   :  { %v214_v22 = vadd.f32 %v210_v14, %v188_v6  ;;  %v215_v23 = vadd.f32 %v211_v15, %v189_v7  ;;  %v216_v24 = vadd.f32 %v212_v16, %v190_v8  ;;  %v225_v25 = vadd.f32 %v224_v11, %v219_v17 }
  0x4f   :  { %v226_v26 = vadd.f32 %v224_v11, %v220_v18  ;;  %v227_v27 = vadd.f32 %v224_v11, %v221_v19  ;;  %v228_v28 = vadd.f32 %v224_v11, %v222_v20  ;;  %v244_v29 = vstv %s1179_s7  ;;  %s1299_s7 = sld [smem:[#allocation5 + $0x10]] }
  0x50   :  { %v250_v30 = vstv %s1181_s8  ;;  %v260_v31 = vstv %s1183_s9  ;;  %v270_v32 = vstv %s1185_s3  ;;  %v229_v33 = vmax.f32 %v225_v25, 0.0  ;;  %s1305_s8 = sld [smem:[#allocation7 + $0x10]]  ;;  %s1307_s9 = sld [smem:[#allocation3 + $0x11]] }
  0x51   :  { %v230_v34 = vmax.f32 %v226_v26, 0.0  ;;  %v231_v35 = vmax.f32 %v227_v27, 0.0  ;;  %v232_v36 = vmax.f32 %v228_v28, 0.0  ;;  %v245_v37 = vmul.f32 %v244_v29, %v1094_v0  ;;  %s1309_s3 = sld [smem:[#allocation5 + $0x11]] }
  0x52   :  { %v246_v38 = vmul.f32 %v244_v29, %v1099_v1  ;;  %v247_v39 = vmul.f32 %v244_v29, %v1104_v2  ;;  %v248_v40 = vmul.f32 %v244_v29, %v1109_v3  ;;  %v235_v41 = vmul.f32 %v234_v12, %v229_v33 }
  0x53   :  { %v236_v42 = vmul.f32 %v234_v12, %v230_v34  ;;  %v237_v43 = vmul.f32 %v234_v12, %v231_v35  ;;  %v238_v44 = vmul.f32 %v234_v12, %v232_v36  ;;  %v251_v45 = vadd.f32 %v250_v30, %v245_v37 }
  0x54   :  { %v252_v46 = vadd.f32 %v250_v30, %v246_v38  ;;  %v253_v47 = vadd.f32 %v250_v30, %v247_v39  ;;  %v254_v48 = vadd.f32 %v250_v30, %v248_v40  ;;  %v239_v49 = vadd.f32 %v235_v41, %v213_v21 }
  0x55   :  { %v240_v50 = vadd.f32 %v236_v42, %v214_v22  ;;  %v241_v51 = vadd.f32 %v237_v43, %v215_v23  ;;  %v242_v52 = vadd.f32 %v238_v44, %v216_v24  ;;  %v255_v53 = vmax.f32 %v251_v45, 0.0 }
  0x56   :  { %v256_v54 = vmax.f32 %v252_v46, 0.0  ;;  %v257_v55 = vmax.f32 %v253_v47, 0.0  ;;  %v258_v56 = vmax.f32 %v254_v48, 0.0  ;;  %v271_v57 = vmul.f32 %v270_v32, %v1094_v0 }
  0x57   :  { %v272_v58 = vmul.f32 %v270_v32, %v1099_v1  ;;  %v273_v59 = vmul.f32 %v270_v32, %v1104_v2  ;;  %v274_v60 = vmul.f32 %v270_v32, %v1109_v3  ;;  %v261_v61 = vmul.f32 %v260_v31, %v255_v53 }
  0x58   :  { %v262_v62 = vmul.f32 %v260_v31, %v256_v54  ;;  %v263_v63 = vmul.f32 %v260_v31, %v257_v55  ;;  %v264_v4 = vmul.f32 %v260_v31, %v258_v56  ;;  %v276_v5 = vstv %s1195_s10  ;;  %s1323_s10 = sld [smem:[#allocation7 + $0x11]] }
  0x59   :  { %v286_v6 = vstv %s1201_s11  ;;  %v296_v7 = vstv %s1203_s12  ;;  %v302_v8 = vstv %s1205_s13  ;;  %v265_v9 = vadd.f32 %v261_v61, %v239_v49  ;;  %s1325_s11 = sld [smem:[#allocation3 + $0x12]] }
  0x5a   :  { %v266_v10 = vadd.f32 %v262_v62, %v240_v50  ;;  %v267_v11 = vadd.f32 %v263_v63, %v241_v51  ;;  %v268_v12 = vadd.f32 %v264_v4, %v242_v52  ;;  %v277_v13 = vadd.f32 %v276_v5, %v271_v57  ;;  %s1327_s12 = sld [smem:[#allocation5 + $0x12]] }
  0x5b   :  { %v278_v14 = vadd.f32 %v276_v5, %v272_v58  ;;  %v279_v15 = vadd.f32 %v276_v5, %v273_v59  ;;  %v280_v16 = vadd.f32 %v276_v5, %v274_v60  ;;  %v297_v17 = vmul.f32 %v296_v7, %v1094_v0  ;;  %s1329_s13 = sld [smem:[#allocation7 + $0x12]] }
  0x5c   :  { %v298_v18 = vmul.f32 %v296_v7, %v1099_v1  ;;  %v299_v19 = vmul.f32 %v296_v7, %v1104_v2  ;;  %v300_v20 = vmul.f32 %v296_v7, %v1109_v3  ;;  %v281_v21 = vmax.f32 %v277_v13, 0.0 }
  0x5d   :  { %v282_v22 = vmax.f32 %v278_v14, 0.0  ;;  %v283_v23 = vmax.f32 %v279_v15, 0.0  ;;  %v284_v24 = vmax.f32 %v280_v16, 0.0  ;;  %v303_v25 = vadd.f32 %v302_v8, %v297_v17 }
  0x5e   :  { %v304_v26 = vadd.f32 %v302_v8, %v298_v18  ;;  %v305_v27 = vadd.f32 %v302_v8, %v299_v19  ;;  %v306_v28 = vadd.f32 %v302_v8, %v300_v20  ;;  %v287_v29 = vmul.f32 %v286_v6, %v281_v21 }
  0x5f   :  { %v288_v30 = vmul.f32 %v286_v6, %v282_v22  ;;  %v289_v31 = vmul.f32 %v286_v6, %v283_v23  ;;  %v290_v32 = vmul.f32 %v286_v6, %v284_v24  ;;  %v307_v33 = vmax.f32 %v303_v25, 0.0 }
  0x60   :  { %v308_v34 = vmax.f32 %v304_v26, 0.0  ;;  %v309_v35 = vmax.f32 %v305_v27, 0.0  ;;  %v310_v36 = vmax.f32 %v306_v28, 0.0  ;;  %v291_v37 = vadd.f32 %v287_v29, %v265_v9 }
  0x61   :  { %v292_v38 = vadd.f32 %v288_v30, %v266_v10  ;;  %v293_v39 = vadd.f32 %v289_v31, %v267_v11  ;;  %v294_v40 = vadd.f32 %v290_v32, %v268_v12  ;;  %v312_v41 = vstv %s1219_s14  ;;  %s1335_s14 = sld [smem:[#allocation3 + $0x13]] }
  0x62   :  { %v322_v42 = vstv %s1221_s15  ;;  %v328_v43 = vstv %s1223_s16  ;;  %v338_v44 = vstv %s1225_s17  ;;  %v313_v45 = vmul.f32 %v312_v41, %v307_v33  ;;  %s1337_s15 = sld [smem:[#allocation5 + $0x13]]  ;;  %s1341_s17 = sld [smem:[#allocation3 + $0x14]] }
  0x63   :  { %v314_v46 = vmul.f32 %v312_v41, %v308_v34  ;;  %v315_v47 = vmul.f32 %v312_v41, %v309_v35  ;;  %v316_v48 = vmul.f32 %v312_v41, %v310_v36  ;;  %v323_v49 = vmul.f32 %v322_v42, %v1094_v0  ;;  %s1339_s16 = sld [smem:[#allocation7 + $0x13]] }
  0x64   :  { %v324_v50 = vmul.f32 %v322_v42, %v1099_v1  ;;  %v325_v51 = vmul.f32 %v322_v42, %v1104_v2  ;;  %v326_v52 = vmul.f32 %v322_v42, %v1109_v3  ;;  %v317_v53 = vadd.f32 %v313_v45, %v291_v37 }
  0x65   :  { %v318_v54 = vadd.f32 %v314_v46, %v292_v38  ;;  %v319_v55 = vadd.f32 %v315_v47, %v293_v39  ;;  %v320_v56 = vadd.f32 %v316_v48, %v294_v40  ;;  %v329_v57 = vadd.f32 %v328_v43, %v323_v49 }
  0x66   :  { %v330_v58 = vadd.f32 %v328_v43, %v324_v50  ;;  %v331_v59 = vadd.f32 %v328_v43, %v325_v51  ;;  %v332_v60 = vadd.f32 %v328_v43, %v326_v52  ;;  %v348_v61 = vstv %s1231_s18  ;;  %s1351_s18 = sld [smem:[#allocation5 + $0x14]] }
  0x67   :  { %v354_v62 = vstv %s1233_s19  ;;  %v364_v63 = vstv %s1235_s20  ;;  %v374_v4 = vstv %s1237_s21  ;;  %v333_v5 = vmax.f32 %v329_v57, 0.0  ;;  %s1357_s19 = sld [smem:[#allocation7 + $0x14]]  ;;  %s1359_s20 = sld [smem:[#allocation3 + $0x15]] }
  0x68   :  { %v334_v6 = vmax.f32 %v330_v58, 0.0  ;;  %v335_v7 = vmax.f32 %v331_v59, 0.0  ;;  %v336_v8 = vmax.f32 %v332_v60, 0.0  ;;  %v349_v9 = vmul.f32 %v348_v61, %v1094_v0  ;;  %s1361_s21 = sld [smem:[#allocation5 + $0x15]] }
  0x69   :  { %v350_v10 = vmul.f32 %v348_v61, %v1099_v1  ;;  %v351_v11 = vmul.f32 %v348_v61, %v1104_v2  ;;  %v352_v12 = vmul.f32 %v348_v61, %v1109_v3  ;;  %v339_v13 = vmul.f32 %v338_v44, %v333_v5 }
  0x6a   :  { %v340_v14 = vmul.f32 %v338_v44, %v334_v6  ;;  %v341_v15 = vmul.f32 %v338_v44, %v335_v7  ;;  %v342_v16 = vmul.f32 %v338_v44, %v336_v8  ;;  %v355_v17 = vadd.f32 %v354_v62, %v349_v9 }
  0x6b   :  { %v356_v18 = vadd.f32 %v354_v62, %v350_v10  ;;  %v357_v19 = vadd.f32 %v354_v62, %v351_v11  ;;  %v358_v20 = vadd.f32 %v354_v62, %v352_v12  ;;  %v343_v21 = vadd.f32 %v339_v13, %v317_v53 }
  0x6c   :  { %v344_v22 = vadd.f32 %v340_v14, %v318_v54  ;;  %v345_v23 = vadd.f32 %v341_v15, %v319_v55  ;;  %v346_v24 = vadd.f32 %v342_v16, %v320_v56  ;;  %v359_v25 = vmax.f32 %v355_v17, 0.0 }
  0x6d   :  { %v360_v26 = vmax.f32 %v356_v18, 0.0  ;;  %v361_v27 = vmax.f32 %v357_v19, 0.0  ;;  %v362_v28 = vmax.f32 %v358_v20, 0.0  ;;  %v375_v29 = vmul.f32 %v374_v4, %v1094_v0 }
  0x6e   :  { %v376_v30 = vmul.f32 %v374_v4, %v1099_v1  ;;  %v377_v31 = vmul.f32 %v374_v4, %v1104_v2  ;;  %v378_v32 = vmul.f32 %v374_v4, %v1109_v3  ;;  %v365_v33 = vmul.f32 %v364_v63, %v359_v25 }
  0x6f   :  { %v366_v34 = vmul.f32 %v364_v63, %v360_v26  ;;  %v367_v35 = vmul.f32 %v364_v63, %v361_v27  ;;  %v368_v36 = vmul.f32 %v364_v63, %v362_v28  ;;  %v380_v37 = vstv %s1247_s22  ;;  %s1481_s22 = sld [smem:[#allocation7 + $0x1c]] }
  0x70   :  { %v390_v38 = vstv %s1253_s23  ;;  %v400_v39 = vstv %s1255_s24  ;;  %v406_v40 = vstv %s1257_s25  ;;  %v369_v41 = vadd.f32 %v365_v33, %v343_v21  ;;  %s1483_s23 = sld [smem:[#allocation3 + $0x1d]] }
  0x71   :  { %v370_v42 = vadd.f32 %v366_v34, %v344_v22  ;;  %v371_v43 = vadd.f32 %v367_v35, %v345_v23  ;;  %v372_v44 = vadd.f32 %v368_v36, %v346_v24  ;;  %v381_v45 = vadd.f32 %v380_v37, %v375_v29  ;;  %s1485_s24 = sld [smem:[#allocation5 + $0x1d]] }
  0x72   :  { %v382_v46 = vadd.f32 %v380_v37, %v376_v30  ;;  %v383_v47 = vadd.f32 %v380_v37, %v377_v31  ;;  %v384_v48 = vadd.f32 %v380_v37, %v378_v32  ;;  %v401_v49 = vmul.f32 %v400_v39, %v1094_v0  ;;  %s1499_s25 = sld [smem:[#allocation7 + $0x1d]] }
  0x73   :  { %v402_v50 = vmul.f32 %v400_v39, %v1099_v1  ;;  %v403_v51 = vmul.f32 %v400_v39, %v1104_v2  ;;  %v404_v52 = vmul.f32 %v400_v39, %v1109_v3  ;;  %v385_v53 = vmax.f32 %v381_v45, 0.0 }
  0x74   :  { %v386_v54 = vmax.f32 %v382_v46, 0.0  ;;  %v387_v55 = vmax.f32 %v383_v47, 0.0  ;;  %v388_v56 = vmax.f32 %v384_v48, 0.0  ;;  %v407_v57 = vadd.f32 %v406_v40, %v401_v49 }
  0x75   :  { %v408_v58 = vadd.f32 %v406_v40, %v402_v50  ;;  %v409_v59 = vadd.f32 %v406_v40, %v403_v51  ;;  %v410_v60 = vadd.f32 %v406_v40, %v404_v52  ;;  %v391_v61 = vmul.f32 %v390_v38, %v385_v53 }
  0x76   :  { %v392_v62 = vmul.f32 %v390_v38, %v386_v54  ;;  %v393_v63 = vmul.f32 %v390_v38, %v387_v55  ;;  %v394_v4 = vmul.f32 %v390_v38, %v388_v56  ;;  %v411_v5 = vmax.f32 %v407_v57, 0.0 }
  0x77   :  { %v412_v6 = vmax.f32 %v408_v58, 0.0  ;;  %v413_v7 = vmax.f32 %v409_v59, 0.0  ;;  %v414_v8 = vmax.f32 %v410_v60, 0.0  ;;  %v395_v9 = vadd.f32 %v391_v61, %v369_v41 }
  0x78   :  { %v396_v10 = vadd.f32 %v392_v62, %v370_v42  ;;  %v397_v11 = vadd.f32 %v393_v63, %v371_v43  ;;  %v398_v12 = vadd.f32 %v394_v4, %v372_v44  ;;  %v416_v13 = vstv %s1271_s26  ;;  %s1501_s26 = sld [smem:[#allocation3 + $0x1e]] }
  0x79   :  { %v426_v14 = vstv %s1273_s2  ;;  %v432_v15 = vstv %s1275_s1  ;;  %v442_v16 = vstv %s1277_s27  ;;  %v417_v17 = vmul.f32 %v416_v13, %v411_v5  ;;  %s1503_s2 = sld [smem:[#allocation5 + $0x1e]]  ;;  %s1511_s27 = sld [smem:[#allocation3 + $0x1f]] }
  0x7a   :  { %v418_v18 = vmul.f32 %v416_v13, %v412_v6  ;;  %v419_v19 = vmul.f32 %v416_v13, %v413_v7  ;;  %v420_v20 = vmul.f32 %v416_v13, %v414_v8  ;;  %v427_v21 = vmul.f32 %v426_v14, %v1094_v0  ;;  %s1509_s1 = sld [smem:[#allocation7 + $0x1e]] }
  0x7b   :  { %v428_v22 = vmul.f32 %v426_v14, %v1099_v1  ;;  %v429_v23 = vmul.f32 %v426_v14, %v1104_v2  ;;  %v430_v24 = vmul.f32 %v426_v14, %v1109_v3  ;;  %v421_v25 = vadd.f32 %v417_v17, %v395_v9 }
  0x7c   :  { %v422_v26 = vadd.f32 %v418_v18, %v396_v10  ;;  %v423_v27 = vadd.f32 %v419_v19, %v397_v11  ;;  %v424_v28 = vadd.f32 %v420_v20, %v398_v12  ;;  %v433_v29 = vadd.f32 %v432_v15, %v427_v21 }
  0x7d   :  { %v434_v30 = vadd.f32 %v432_v15, %v428_v22  ;;  %v435_v31 = vadd.f32 %v432_v15, %v429_v23  ;;  %v436_v32 = vadd.f32 %v432_v15, %v430_v24  ;;  %v452_v33 = vstv %s1283_s28  ;;  %s1395_s28 = sld [smem:[#allocation7 + $0x15]] }
  0x7e   :  { %v458_v34 = vstv %s1285_s29  ;;  %v468_v35 = vstv %s1287_s30  ;;  %v478_v36 = vstv %s1289_s6  ;;  %v437_v37 = vmax.f32 %v433_v29, 0.0  ;;  %s1397_s29 = sld [smem:[#allocation3 + $0x16]]  ;;  %s1407_s6 = sld [smem:[#allocation3 + $0x17]] }
  0x7f   :  { %v438_v38 = vmax.f32 %v434_v30, 0.0  ;;  %v439_v39 = vmax.f32 %v435_v31, 0.0  ;;  %v440_v40 = vmax.f32 %v436_v32, 0.0  ;;  %v453_v41 = vmul.f32 %v452_v33, %v1094_v0  ;;  %s1401_s30 = sld [smem:[#allocation7 + $0x16]] }
  0x80   :  { %v454_v42 = vmul.f32 %v452_v33, %v1099_v1  ;;  %v455_v43 = vmul.f32 %v452_v33, %v1104_v2  ;;  %v456_v44 = vmul.f32 %v452_v33, %v1109_v3  ;;  %v443_v45 = vmul.f32 %v442_v16, %v437_v37 }
  0x81   :  { %v444_v46 = vmul.f32 %v442_v16, %v438_v38  ;;  %v445_v47 = vmul.f32 %v442_v16, %v439_v39  ;;  %v446_v48 = vmul.f32 %v442_v16, %v440_v40  ;;  %v459_v49 = vadd.f32 %v458_v34, %v453_v41 }
  0x82   :  { %v460_v50 = vadd.f32 %v458_v34, %v454_v42  ;;  %v461_v51 = vadd.f32 %v458_v34, %v455_v43  ;;  %v462_v52 = vadd.f32 %v458_v34, %v456_v44  ;;  %v447_v53 = vadd.f32 %v443_v45, %v421_v25 }
  0x83   :  { %v448_v54 = vadd.f32 %v444_v46, %v422_v26  ;;  %v449_v55 = vadd.f32 %v445_v47, %v423_v27  ;;  %v450_v56 = vadd.f32 %v446_v48, %v424_v28  ;;  %v463_v57 = vmax.f32 %v459_v49, 0.0 }
  0x84   :  { %v464_v58 = vmax.f32 %v460_v50, 0.0  ;;  %v465_v59 = vmax.f32 %v461_v51, 0.0  ;;  %v466_v60 = vmax.f32 %v462_v52, 0.0  ;;  %v479_v61 = vmul.f32 %v478_v36, %v1094_v0 }
  0x85   :  { %v480_v62 = vmul.f32 %v478_v36, %v1099_v1  ;;  %v481_v63 = vmul.f32 %v478_v36, %v1104_v2  ;;  %v482_v4 = vmul.f32 %v478_v36, %v1109_v3  ;;  %v469_v5 = vmul.f32 %v468_v35, %v463_v57 }
  0x86   :  { %v470_v6 = vmul.f32 %v468_v35, %v464_v58  ;;  %v471_v7 = vmul.f32 %v468_v35, %v465_v59  ;;  %v472_v8 = vmul.f32 %v468_v35, %v466_v60  ;;  %v484_v9 = vstv %s1299_s7  ;;  %s1409_s7 = sld [smem:[#allocation5 + $0x17]] }
  0x87   :  { %v494_v10 = vstv %s1305_s8  ;;  %v504_v11 = vstv %s1307_s9  ;;  %v510_v12 = vstv %s1309_s3  ;;  %v473_v13 = vadd.f32 %v469_v5, %v447_v53  ;;  %s1411_s8 = sld [smem:[#allocation7 + $0x17]]  ;;  %s1413_s9 = sld [smem:[#allocation3 + $0x18]] }
  0x88   :  { %v474_v14 = vadd.f32 %v470_v6, %v448_v54  ;;  %v475_v15 = vadd.f32 %v471_v7, %v449_v55  ;;  %v476_v16 = vadd.f32 %v472_v8, %v450_v56  ;;  %v485_v17 = vadd.f32 %v484_v9, %v479_v61  ;;  %s1423_s3 = sld [smem:[#allocation5 + $0x18]] }
  0x89   :  { %v486_v18 = vadd.f32 %v484_v9, %v480_v62  ;;  %v487_v19 = vadd.f32 %v484_v9, %v481_v63  ;;  %v488_v20 = vadd.f32 %v484_v9, %v482_v4  ;;  %v505_v21 = vmul.f32 %v504_v11, %v1094_v0 }
  0x8a   :  { %v506_v22 = vmul.f32 %v504_v11, %v1099_v1  ;;  %v507_v23 = vmul.f32 %v504_v11, %v1104_v2  ;;  %v508_v24 = vmul.f32 %v504_v11, %v1109_v3  ;;  %v489_v25 = vmax.f32 %v485_v17, 0.0 }
  0x8b   :  { %v490_v26 = vmax.f32 %v486_v18, 0.0  ;;  %v491_v27 = vmax.f32 %v487_v19, 0.0  ;;  %v492_v28 = vmax.f32 %v488_v20, 0.0  ;;  %v511_v29 = vadd.f32 %v510_v12, %v505_v21 }
  0x8c   :  { %v512_v30 = vadd.f32 %v510_v12, %v506_v22  ;;  %v513_v31 = vadd.f32 %v510_v12, %v507_v23  ;;  %v514_v32 = vadd.f32 %v510_v12, %v508_v24  ;;  %v495_v33 = vmul.f32 %v494_v10, %v489_v25 }
  0x8d   :  { %v496_v34 = vmul.f32 %v494_v10, %v490_v26  ;;  %v497_v35 = vmul.f32 %v494_v10, %v491_v27  ;;  %v498_v36 = vmul.f32 %v494_v10, %v492_v28  ;;  %v515_v37 = vmax.f32 %v511_v29, 0.0 }
  0x8e   :  { %v516_v38 = vmax.f32 %v512_v30, 0.0  ;;  %v517_v39 = vmax.f32 %v513_v31, 0.0  ;;  %v518_v40 = vmax.f32 %v514_v32, 0.0  ;;  %v499_v41 = vadd.f32 %v495_v33, %v473_v13  ;;  %v1376_v31 = vld [vmem:[%s1547_s0 + $0x8] sm:$0xff]  ;;  %v1382_v33 = vld [vmem:[%s1547_s0 + $0x10] sm:$0xff] }
  0x8f   :  { %v500_v42 = vadd.f32 %v496_v34, %v474_v14  ;;  %v501_v43 = vadd.f32 %v497_v35, %v475_v15  ;;  %v502_v44 = vadd.f32 %v498_v36, %v476_v16  ;;  %v520_v45 = vstv %s1323_s10  ;;  %v1388_v35 = vld [vmem:[%s1547_s0 + $0x18] sm:$0xff]  ;;  %s1429_s10 = sld [smem:[#allocation7 + $0x18]] }
  0x90   :  { %v530_v46 = vstv %s1325_s11  ;;  %v536_v47 = vstv %s1327_s12  ;;  %v546_v48 = vstv %s1329_s13  ;;  %v521_v49 = vmul.f32 %v520_v45, %v515_v37  ;;  %s1431_s11 = sld [smem:[#allocation3 + $0x19]] }
  0x91   :  { %v522_v50 = vmul.f32 %v520_v45, %v516_v38  ;;  %v523_v51 = vmul.f32 %v520_v45, %v517_v39  ;;  %v524_v52 = vmul.f32 %v520_v45, %v518_v40  ;;  %v531_v53 = vmul.f32 %v530_v46, %v1094_v0  ;;  %s1433_s12 = sld [smem:[#allocation5 + $0x19]] }
  0x92   :  { %v532_v54 = vmul.f32 %v530_v46, %v1099_v1  ;;  %v533_v55 = vmul.f32 %v530_v46, %v1104_v2  ;;  %v534_v56 = vmul.f32 %v530_v46, %v1109_v3  ;;  %v525_v57 = vadd.f32 %v521_v49, %v499_v41  ;;  %s1447_s13 = sld [smem:[#allocation7 + $0x19]] }
  0x93   :  { %v526_v58 = vadd.f32 %v522_v50, %v500_v42  ;;  %v527_v59 = vadd.f32 %v523_v51, %v501_v43  ;;  %v528_v60 = vadd.f32 %v524_v52, %v502_v44  ;;  %v537_v61 = vadd.f32 %v536_v47, %v531_v53 }
  0x94   :  { %v538_v62 = vadd.f32 %v536_v47, %v532_v54  ;;  %v539_v63 = vadd.f32 %v536_v47, %v533_v55  ;;  %v540_v4 = vadd.f32 %v536_v47, %v534_v56  ;;  %v556_v5 = vstv %s1335_s14  ;;  %s1449_s14 = sld [smem:[#allocation3 + $0x1a]] }
  0x95   :  { %v562_v6 = vstv %s1337_s15  ;;  %v572_v7 = vstv %s1339_s16  ;;  %v582_v8 = vstv %s1341_s17  ;;  %v541_v9 = vmax.f32 %v537_v61, 0.0  ;;  %s1451_s15 = sld [smem:[#allocation5 + $0x1a]]  ;;  %s1459_s17 = sld [smem:[#allocation3 + $0x1b]] }
  0x96   :  { %v542_v10 = vmax.f32 %v538_v62, 0.0  ;;  %v543_v11 = vmax.f32 %v539_v63, 0.0  ;;  %v544_v12 = vmax.f32 %v540_v4, 0.0  ;;  %v557_v13 = vmul.f32 %v556_v5, %v1094_v0  ;;  %s1453_s16 = sld [smem:[#allocation7 + $0x1a]] }
  0x97   :  { %v558_v14 = vmul.f32 %v556_v5, %v1099_v1  ;;  %v559_v15 = vmul.f32 %v556_v5, %v1104_v2  ;;  %v560_v16 = vmul.f32 %v556_v5, %v1109_v3  ;;  %v547_v17 = vmul.f32 %v546_v48, %v541_v9  ;;  %v1370_v3 = vld [vmem:[%s1547_s0] sm:$0xff]  ;;  %s1399_s0 = sld [smem:[#allocation5 + $0x16]] }
  0x98   :  { %v548_v18 = vmul.f32 %v546_v48, %v542_v10  ;;  %v549_v19 = vmul.f32 %v546_v48, %v543_v11  ;;  %v550_v20 = vmul.f32 %v546_v48, %v544_v12  ;;  %v563_v21 = vadd.f32 %v562_v6, %v557_v13 }
  0x99   :  { %v564_v22 = vadd.f32 %v562_v6, %v558_v14  ;;  %v565_v23 = vadd.f32 %v562_v6, %v559_v15  ;;  %v566_v24 = vadd.f32 %v562_v6, %v560_v16  ;;  %v551_v25 = vadd.f32 %v547_v17, %v525_v57 }
  0x9a   :  { %v552_v26 = vadd.f32 %v548_v18, %v526_v58  ;;  %v553_v27 = vadd.f32 %v549_v19, %v527_v59  ;;  %v554_v28 = vadd.f32 %v550_v20, %v528_v60  ;;  %v567_v29 = vmax.f32 %v563_v21, 0.0 }
  0x9b   :  { %v568_v0 = vmax.f32 %v564_v22, 0.0  ;;  %v569_v1 = vmax.f32 %v565_v23, 0.0  ;;  %v570_v2 = vmax.f32 %v566_v24, 0.0  ;;  %v583_v30 = vmul.f32 %v1370_v3, %v582_v8 }
  0x9c   :  { %v584_v32 = vmul.f32 %v1376_v31, %v582_v8  ;;  %v585_v34 = vmul.f32 %v1382_v33, %v582_v8  ;;  %v586_v36 = vmul.f32 %v1388_v35, %v582_v8  ;;  %v573_v37 = vmul.f32 %v572_v7, %v567_v29 }
  0x9d   :  { %v574_v38 = vmul.f32 %v572_v7, %v568_v0  ;;  %v575_v39 = vmul.f32 %v572_v7, %v569_v1  ;;  %v576_v40 = vmul.f32 %v572_v7, %v570_v2  ;;  %v588_v41 = vstv %s1351_s18  ;;  %s1461_s18 = sld [smem:[#allocation5 + $0x1b]] }
  0x9e   :  { %v598_v42 = vstv %s1357_s19  ;;  %v608_v43 = vstv %s1359_s20  ;;  %v614_v44 = vstv %s1361_s21  ;;  %v577_v45 = vadd.f32 %v573_v37, %v551_v25  ;;  %s1463_s19 = sld [smem:[#allocation7 + $0x1b]]  ;;  %s1465_s20 = sld [smem:[#allocation3 + $0x1c]] }
  0x9f   :  { %v578_v46 = vadd.f32 %v574_v38, %v552_v26  ;;  %v579_v47 = vadd.f32 %v575_v39, %v553_v27  ;;  %v580_v48 = vadd.f32 %v576_v40, %v554_v28  ;;  %v589_v49 = vadd.f32 %v588_v41, %v583_v30  ;;  %s1475_s21 = sld [smem:[#allocation5 + $0x1c]] }
  0xa0   :  { %v590_v50 = vadd.f32 %v588_v41, %v584_v32  ;;  %v591_v51 = vadd.f32 %v588_v41, %v585_v34  ;;  %v592_v52 = vadd.f32 %v588_v41, %v586_v36  ;;  %v609_v53 = vmul.f32 %v1370_v3, %v608_v43 }
  0xa1   :  { %v610_v54 = vmul.f32 %v1376_v31, %v608_v43  ;;  %v611_v55 = vmul.f32 %v1382_v33, %v608_v43  ;;  %v612_v56 = vmul.f32 %v1388_v35, %v608_v43  ;;  %v593_v57 = vmax.f32 %v589_v49, 0.0 }
  0xa2   :  { %v594_v58 = vmax.f32 %v590_v50, 0.0  ;;  %v595_v59 = vmax.f32 %v591_v51, 0.0  ;;  %v596_v60 = vmax.f32 %v592_v52, 0.0  ;;  %v615_v61 = vadd.f32 %v614_v44, %v609_v53 }
  0xa3   :  { %v616_v62 = vadd.f32 %v614_v44, %v610_v54  ;;  %v617_v63 = vadd.f32 %v614_v44, %v611_v55  ;;  %v618_v4 = vadd.f32 %v614_v44, %v612_v56  ;;  %v599_v5 = vmul.f32 %v598_v42, %v593_v57 }
  0xa4   :  { %v600_v6 = vmul.f32 %v598_v42, %v594_v58  ;;  %v601_v7 = vmul.f32 %v598_v42, %v595_v59  ;;  %v602_v8 = vmul.f32 %v598_v42, %v596_v60  ;;  %v619_v9 = vmax.f32 %v615_v61, 0.0 }
  0xa5   :  { %v620_v10 = vmax.f32 %v616_v62, 0.0  ;;  %v621_v11 = vmax.f32 %v617_v63, 0.0  ;;  %v622_v12 = vmax.f32 %v618_v4, 0.0  ;;  %v603_v13 = vadd.f32 %v599_v5, %v577_v45 }
  0xa6   :  { %v604_v14 = vadd.f32 %v600_v6, %v578_v46  ;;  %v605_v15 = vadd.f32 %v601_v7, %v579_v47  ;;  %v606_v16 = vadd.f32 %v602_v8, %v580_v48  ;;  %v624_v17 = vstv %s1395_s28  ;;  %s1513_s28 = sld [smem:[#allocation5 + $0x1f]] }
  0xa7   :  { %v634_v18 = vstv %s1397_s29  ;;  %v640_v19 = vstv %s1399_s0  ;;  %v650_v20 = vstv %s1401_s30  ;;  %v625_v21 = vmul.f32 %v624_v17, %v619_v9  ;;  %s1515_s29 = sld [smem:[#allocation7 + $0x1f]] }
  0xa8   :  { %v626_v22 = vmul.f32 %v624_v17, %v620_v10  ;;  %v627_v23 = vmul.f32 %v624_v17, %v621_v11  ;;  %v628_v24 = vmul.f32 %v624_v17, %v622_v12  ;;  %v635_v25 = vmul.f32 %v1370_v3, %v634_v18 }
  0xa9   :  { %v636_v26 = vmul.f32 %v1376_v31, %v634_v18  ;;  %v637_v27 = vmul.f32 %v1382_v33, %v634_v18  ;;  %v638_v28 = vmul.f32 %v1388_v35, %v634_v18  ;;  %v629_v29 = vadd.f32 %v625_v21, %v603_v13 }
  0xaa   :  { %v630_v0 = vadd.f32 %v626_v22, %v604_v14  ;;  %v631_v1 = vadd.f32 %v627_v23, %v605_v15  ;;  %v632_v2 = vadd.f32 %v628_v24, %v606_v16  ;;  %v641_v30 = vadd.f32 %v640_v19, %v635_v25 }
  0xab   :  { %v642_v32 = vadd.f32 %v640_v19, %v636_v26  ;;  %v643_v34 = vadd.f32 %v640_v19, %v637_v27  ;;  %v644_v36 = vadd.f32 %v640_v19, %v638_v28  ;;  %v660_v37 = vstv %s1407_s6 }
  0xac   :  { %v666_v38 = vstv %s1409_s7  ;;  %v676_v39 = vstv %s1411_s8  ;;  %v686_v40 = vstv %s1413_s9  ;;  %v645_v41 = vmax.f32 %v641_v30, 0.0 }
  0xad   :  { %v646_v42 = vmax.f32 %v642_v32, 0.0  ;;  %v647_v43 = vmax.f32 %v643_v34, 0.0  ;;  %v648_v44 = vmax.f32 %v644_v36, 0.0  ;;  %v661_v45 = vmul.f32 %v1370_v3, %v660_v37 }
  0xae   :  { %v662_v46 = vmul.f32 %v1376_v31, %v660_v37  ;;  %v663_v47 = vmul.f32 %v1382_v33, %v660_v37  ;;  %v664_v48 = vmul.f32 %v1388_v35, %v660_v37  ;;  %v651_v49 = vmul.f32 %v650_v20, %v645_v41 }
  0xaf   :  { %v652_v50 = vmul.f32 %v650_v20, %v646_v42  ;;  %v653_v51 = vmul.f32 %v650_v20, %v647_v43  ;;  %v654_v52 = vmul.f32 %v650_v20, %v648_v44  ;;  %v667_v53 = vadd.f32 %v666_v38, %v661_v45 }
  0xb0   :  { %v668_v54 = vadd.f32 %v666_v38, %v662_v46  ;;  %v669_v55 = vadd.f32 %v666_v38, %v663_v47  ;;  %v670_v56 = vadd.f32 %v666_v38, %v664_v48  ;;  %v655_v57 = vadd.f32 %v651_v49, %v629_v29 }
  0xb1   :  { %v656_v58 = vadd.f32 %v652_v50, %v630_v0  ;;  %v657_v59 = vadd.f32 %v653_v51, %v631_v1  ;;  %v658_v60 = vadd.f32 %v654_v52, %v632_v2  ;;  %v671_v61 = vmax.f32 %v667_v53, 0.0 }
  0xb2   :  { %v672_v62 = vmax.f32 %v668_v54, 0.0  ;;  %v673_v63 = vmax.f32 %v669_v55, 0.0  ;;  %v674_v4 = vmax.f32 %v670_v56, 0.0  ;;  %v687_v5 = vmul.f32 %v1370_v3, %v686_v40 }
  0xb3   :  { %v688_v6 = vmul.f32 %v1376_v31, %v686_v40  ;;  %v689_v7 = vmul.f32 %v1382_v33, %v686_v40  ;;  %v690_v8 = vmul.f32 %v1388_v35, %v686_v40  ;;  %v677_v9 = vmul.f32 %v676_v39, %v671_v61 }
  0xb4   :  { %v678_v10 = vmul.f32 %v676_v39, %v672_v62  ;;  %v679_v11 = vmul.f32 %v676_v39, %v673_v63  ;;  %v680_v12 = vmul.f32 %v676_v39, %v674_v4  ;;  %v692_v13 = vstv %s1423_s3 }
  0xb5   :  { %v702_v14 = vstv %s1429_s10  ;;  %v712_v15 = vstv %s1431_s11  ;;  %v718_v16 = vstv %s1433_s12  ;;  %v681_v17 = vadd.f32 %v677_v9, %v655_v57 }
  0xb6   :  { %v682_v18 = vadd.f32 %v678_v10, %v656_v58  ;;  %v683_v19 = vadd.f32 %v679_v11, %v657_v59  ;;  %v684_v20 = vadd.f32 %v680_v12, %v658_v60  ;;  %v693_v21 = vadd.f32 %v692_v13, %v687_v5 }
  0xb7   :  { %v694_v22 = vadd.f32 %v692_v13, %v688_v6  ;;  %v695_v23 = vadd.f32 %v692_v13, %v689_v7  ;;  %v696_v24 = vadd.f32 %v692_v13, %v690_v8  ;;  %v713_v25 = vmul.f32 %v1370_v3, %v712_v15 }
  0xb8   :  { %v714_v26 = vmul.f32 %v1376_v31, %v712_v15  ;;  %v715_v27 = vmul.f32 %v1382_v33, %v712_v15  ;;  %v716_v28 = vmul.f32 %v1388_v35, %v712_v15  ;;  %v697_v29 = vmax.f32 %v693_v21, 0.0 }
  0xb9   :  { %v698_v0 = vmax.f32 %v694_v22, 0.0  ;;  %v699_v1 = vmax.f32 %v695_v23, 0.0  ;;  %v700_v2 = vmax.f32 %v696_v24, 0.0  ;;  %v719_v30 = vadd.f32 %v718_v16, %v713_v25 }
  0xba   :  { %v720_v32 = vadd.f32 %v718_v16, %v714_v26  ;;  %v721_v34 = vadd.f32 %v718_v16, %v715_v27  ;;  %v722_v36 = vadd.f32 %v718_v16, %v716_v28  ;;  %v703_v37 = vmul.f32 %v702_v14, %v697_v29 }
  0xbb   :  { %v704_v38 = vmul.f32 %v702_v14, %v698_v0  ;;  %v705_v39 = vmul.f32 %v702_v14, %v699_v1  ;;  %v706_v40 = vmul.f32 %v702_v14, %v700_v2  ;;  %v723_v41 = vmax.f32 %v719_v30, 0.0 }
  0xbc   :  { %v724_v42 = vmax.f32 %v720_v32, 0.0  ;;  %v725_v43 = vmax.f32 %v721_v34, 0.0  ;;  %v726_v44 = vmax.f32 %v722_v36, 0.0  ;;  %v707_v45 = vadd.f32 %v703_v37, %v681_v17 }
  0xbd   :  { %v708_v46 = vadd.f32 %v704_v38, %v682_v18  ;;  %v709_v47 = vadd.f32 %v705_v39, %v683_v19  ;;  %v710_v48 = vadd.f32 %v706_v40, %v684_v20  ;;  %v728_v49 = vstv %s1447_s13 }
  0xbe   :  { %v738_v50 = vstv %s1449_s14  ;;  %v744_v51 = vstv %s1451_s15  ;;  %v754_v52 = vstv %s1453_s16  ;;  %v729_v53 = vmul.f32 %v728_v49, %v723_v41 }
  0xbf   :  { %v730_v54 = vmul.f32 %v728_v49, %v724_v42  ;;  %v731_v55 = vmul.f32 %v728_v49, %v725_v43  ;;  %v732_v56 = vmul.f32 %v728_v49, %v726_v44  ;;  %v739_v57 = vmul.f32 %v1370_v3, %v738_v50 }
  0xc0   :  { %v740_v58 = vmul.f32 %v1376_v31, %v738_v50  ;;  %v741_v59 = vmul.f32 %v1382_v33, %v738_v50  ;;  %v742_v60 = vmul.f32 %v1388_v35, %v738_v50  ;;  %v733_v61 = vadd.f32 %v729_v53, %v707_v45 }
  0xc1   :  { %v734_v62 = vadd.f32 %v730_v54, %v708_v46  ;;  %v735_v63 = vadd.f32 %v731_v55, %v709_v47  ;;  %v736_v4 = vadd.f32 %v732_v56, %v710_v48  ;;  %v745_v5 = vadd.f32 %v744_v51, %v739_v57 }
  0xc2   :  { %v746_v6 = vadd.f32 %v744_v51, %v740_v58  ;;  %v747_v7 = vadd.f32 %v744_v51, %v741_v59  ;;  %v748_v8 = vadd.f32 %v744_v51, %v742_v60  ;;  %v764_v9 = vstv %s1459_s17 }
  0xc3   :  { %v770_v10 = vstv %s1461_s18  ;;  %v780_v11 = vstv %s1463_s19  ;;  %v790_v12 = vstv %s1465_s20  ;;  %v749_v13 = vmax.f32 %v745_v5, 0.0 }
  0xc4   :  { %v750_v14 = vmax.f32 %v746_v6, 0.0  ;;  %v751_v15 = vmax.f32 %v747_v7, 0.0  ;;  %v752_v16 = vmax.f32 %v748_v8, 0.0  ;;  %v765_v17 = vmul.f32 %v1370_v3, %v764_v9 }
  0xc5   :  { %v766_v18 = vmul.f32 %v1376_v31, %v764_v9  ;;  %v767_v19 = vmul.f32 %v1382_v33, %v764_v9  ;;  %v768_v20 = vmul.f32 %v1388_v35, %v764_v9  ;;  %v755_v21 = vmul.f32 %v754_v52, %v749_v13 }
  0xc6   :  { %v756_v22 = vmul.f32 %v754_v52, %v750_v14  ;;  %v757_v23 = vmul.f32 %v754_v52, %v751_v15  ;;  %v758_v24 = vmul.f32 %v754_v52, %v752_v16  ;;  %v771_v25 = vadd.f32 %v770_v10, %v765_v17 }
  0xc7   :  { %v772_v26 = vadd.f32 %v770_v10, %v766_v18  ;;  %v773_v27 = vadd.f32 %v770_v10, %v767_v19  ;;  %v774_v28 = vadd.f32 %v770_v10, %v768_v20  ;;  %v759_v29 = vadd.f32 %v755_v21, %v733_v61 }
  0xc8   :  { %v760_v0 = vadd.f32 %v756_v22, %v734_v62  ;;  %v761_v1 = vadd.f32 %v757_v23, %v735_v63  ;;  %v762_v2 = vadd.f32 %v758_v24, %v736_v4  ;;  %v775_v30 = vmax.f32 %v771_v25, 0.0 }
  0xc9   :  { %v776_v32 = vmax.f32 %v772_v26, 0.0  ;;  %v777_v34 = vmax.f32 %v773_v27, 0.0  ;;  %v778_v36 = vmax.f32 %v774_v28, 0.0  ;;  %v791_v37 = vmul.f32 %v1370_v3, %v790_v12 }
  0xca   :  { %v792_v38 = vmul.f32 %v1376_v31, %v790_v12  ;;  %v793_v39 = vmul.f32 %v1382_v33, %v790_v12  ;;  %v794_v40 = vmul.f32 %v1388_v35, %v790_v12  ;;  %v781_v41 = vmul.f32 %v780_v11, %v775_v30 }
  0xcb   :  { %v782_v42 = vmul.f32 %v780_v11, %v776_v32  ;;  %v783_v43 = vmul.f32 %v780_v11, %v777_v34  ;;  %v784_v44 = vmul.f32 %v780_v11, %v778_v36  ;;  %v796_v45 = vstv %s1475_s21 }
  0xcc   :  { %v806_v46 = vstv %s1481_s22  ;;  %v816_v47 = vstv %s1483_s23  ;;  %v822_v48 = vstv %s1485_s24  ;;  %v785_v49 = vadd.f32 %v781_v41, %v759_v29 }
  0xcd   :  { %v786_v50 = vadd.f32 %v782_v42, %v760_v0  ;;  %v787_v51 = vadd.f32 %v783_v43, %v761_v1  ;;  %v788_v52 = vadd.f32 %v784_v44, %v762_v2  ;;  %v797_v53 = vadd.f32 %v796_v45, %v791_v37 }
  0xce   :  { %v798_v54 = vadd.f32 %v796_v45, %v792_v38  ;;  %v799_v55 = vadd.f32 %v796_v45, %v793_v39  ;;  %v800_v56 = vadd.f32 %v796_v45, %v794_v40  ;;  %v817_v57 = vmul.f32 %v1370_v3, %v816_v47 }
  0xcf   :  { %v818_v58 = vmul.f32 %v1376_v31, %v816_v47  ;;  %v819_v59 = vmul.f32 %v1382_v33, %v816_v47  ;;  %v820_v60 = vmul.f32 %v1388_v35, %v816_v47  ;;  %v801_v61 = vmax.f32 %v797_v53, 0.0 }
  0xd0   :  { %v802_v62 = vmax.f32 %v798_v54, 0.0  ;;  %v803_v63 = vmax.f32 %v799_v55, 0.0  ;;  %v804_v4 = vmax.f32 %v800_v56, 0.0  ;;  %v823_v5 = vadd.f32 %v822_v48, %v817_v57 }
  0xd1   :  { %v824_v6 = vadd.f32 %v822_v48, %v818_v58  ;;  %v825_v7 = vadd.f32 %v822_v48, %v819_v59  ;;  %v826_v8 = vadd.f32 %v822_v48, %v820_v60  ;;  %v807_v9 = vmul.f32 %v806_v46, %v801_v61 }
  0xd2   :  { %v808_v10 = vmul.f32 %v806_v46, %v802_v62  ;;  %v809_v11 = vmul.f32 %v806_v46, %v803_v63  ;;  %v810_v12 = vmul.f32 %v806_v46, %v804_v4  ;;  %v827_v13 = vmax.f32 %v823_v5, 0.0 }
  0xd3   :  { %v828_v14 = vmax.f32 %v824_v6, 0.0  ;;  %v829_v15 = vmax.f32 %v825_v7, 0.0  ;;  %v830_v16 = vmax.f32 %v826_v8, 0.0  ;;  %v811_v17 = vadd.f32 %v807_v9, %v785_v49 }
  0xd4   :  { %v812_v18 = vadd.f32 %v808_v10, %v786_v50  ;;  %v813_v19 = vadd.f32 %v809_v11, %v787_v51  ;;  %v814_v20 = vadd.f32 %v810_v12, %v788_v52  ;;  %v832_v21 = vstv %s1499_s25 }
  0xd5   :  { %v842_v22 = vstv %s1501_s26  ;;  %v848_v23 = vstv %s1503_s2  ;;  %v833_v24 = vmul.f32 %v832_v21, %v827_v13  ;;  %v834_v25 = vmul.f32 %v832_v21, %v828_v14 }
  0xd6   :  { %v835_v26 = vmul.f32 %v832_v21, %v829_v15  ;;  %v836_v27 = vmul.f32 %v832_v21, %v830_v16  ;;  %v843_v28 = vmul.f32 %v1370_v3, %v842_v22  ;;  %v844_v29 = vmul.f32 %v1376_v31, %v842_v22 }
  0xd7   :  { %v845_v0 = vmul.f32 %v1382_v33, %v842_v22  ;;  %v846_v1 = vmul.f32 %v1388_v35, %v842_v22  ;;  %v837_v2 = vadd.f32 %v833_v24, %v811_v17  ;;  %v838_v30 = vadd.f32 %v834_v25, %v812_v18 }
  0xd8   :  { %v839_v32 = vadd.f32 %v835_v26, %v813_v19  ;;  %v858_v34 = vstv %s1509_s1  ;;  %v849_v36 = vadd.f32 %v848_v23, %v843_v28  ;;  %v850_v37 = vadd.f32 %v848_v23, %v844_v29 }
  0xd9   :  { %v851_v38 = vadd.f32 %v848_v23, %v845_v0  ;;  %v852_v39 = vadd.f32 %v848_v23, %v846_v1  ;;  %v840_v40 = vadd.f32 %v836_v27, %v814_v20  ;;  %v868_v41 = vstv %s1511_s27 }
  0xda   :  { %v874_v42 = vstv %s1513_s28  ;;  %v884_v43 = vstv %s1515_s29  ;;  %v853_v44 = vmax.f32 %v849_v36, 0.0  ;;  %v854_v45 = vmax.f32 %v850_v37, 0.0 }
  0xdb   :  { %v855_v46 = vmax.f32 %v851_v38, 0.0  ;;  %v856_v47 = vmax.f32 %v852_v39, 0.0  ;;  %v869_v48 = vmul.f32 %v1370_v3, %v868_v41  ;;  %v870_v49 = vmul.f32 %v1376_v31, %v868_v41 }
  0xdc   :  { %v871_v50 = vmul.f32 %v1382_v33, %v868_v41  ;;  %v872_v51 = vmul.f32 %v1388_v35, %v868_v41  ;;  %v859_v52 = vmul.f32 %v858_v34, %v853_v44  ;;  %v860_v53 = vmul.f32 %v858_v34, %v854_v45 }
  0xdd   :  { %v861_v54 = vmul.f32 %v858_v34, %v855_v46  ;;  %v862_v55 = vmul.f32 %v858_v34, %v856_v47  ;;  %v875_v56 = vadd.f32 %v874_v42, %v869_v48  ;;  %v876_v57 = vadd.f32 %v874_v42, %v870_v49 }
  0xde   :  { %v877_v58 = vadd.f32 %v874_v42, %v871_v50  ;;  %v878_v59 = vadd.f32 %v874_v42, %v872_v51  ;;  %v863_v60 = vadd.f32 %v859_v52, %v837_v2  ;;  %v864_v61 = vadd.f32 %v860_v53, %v838_v30 }
  0xdf   :  { %v865_v62 = vadd.f32 %v861_v54, %v839_v32  ;;  %v866_v63 = vadd.f32 %v862_v55, %v840_v40  ;;  %v879_v4 = vmax.f32 %v875_v56, 0.0  ;;  %v880_v3 = vmax.f32 %v876_v57, 0.0 }
  0xe0   :  { %v881_v5 = vmax.f32 %v877_v58, 0.0  ;;  %v882_v31 = vmax.f32 %v878_v59, 0.0  ;;  %v894_v8 = vstv %s1551_s4 }
  0xe1   :  { %v885_v6 = vmul.f32 %v884_v43, %v879_v4  ;;  %v886_v33 = vmul.f32 %v884_v43, %v880_v3 }
  0xe2   :  { %v887_v7 = vmul.f32 %v884_v43, %v881_v5  ;;  %v888_v35 = vmul.f32 %v884_v43, %v882_v31 }
  0xe3   :  { %v889_v9 = vadd.f32 %v885_v6, %v863_v60  ;;  %v890_v10 = vadd.f32 %v886_v33, %v864_v61 }
  0xe4   :  { %v891_v11 = vadd.f32 %v887_v7, %v865_v62  ;;  %v892_v12 = vadd.f32 %v888_v35, %v866_v63 }
  0xe5   :  { %v895_v13 = vadd.f32 %v894_v8, %v889_v9  ;;  %v896_v14 = vadd.f32 %v894_v8, %v890_v10 }
  0xe6   :  { %v897_v15 = vadd.f32 %v894_v8, %v891_v11  ;;  %v898_v16 = vadd.f32 %v894_v8, %v892_v12 }
  0xe7   :  { %899 = vst [vmem:[%s1552_s5] sm:$0xff] %v895_v13  ;;  %900 = vst [vmem:[%s1552_s5 + $0x8] sm:$0xff] %v896_v14 }
  0xe8   :  { %901 = vst [vmem:[%s1552_s5 + $0x10] sm:$0xff] %v897_v15  ;;  %902 = vst [vmem:[%s1552_s5 + $0x18] sm:$0xff] %v898_v16 }
  0xe9   :  { %907 = vsyncpa [#allocation4], 1 }
  0xea   :  { %908 = vsyncpa [#allocation6], 1 }

</bundles_post_ra>
